<compile_context>
chip_gen: v6e
topology: v6e:2x2x1
jax: 0.10.0
libtpu: 0.0.40
codegen_flags: <defaults>
</compile_context>

<pallas_src>
import functools

import jax
import jax.numpy as jnp
from jax.experimental import pallas as pl
from jax.experimental.pallas import tpu as pltpu


def _round_up(v, m):
    return -(-v // m) * m


def _slab_cols(TQ, U, WP):
    """Flattened (padded) lane extent of one row slab."""
    return _round_up((TQ + U - 1) * WP + (U - 1), 128)


def _vmem_bytes(TQ, *, U, WP, C2i, KKC, C2o_tot):
    """Conservative per-step VMEM estimate (double-buffered blocks + scratch)."""
    P = TQ * WP
    L = _slab_cols(TQ, U, WP)
    x_blk = _round_up(C2i, 16) * L * 2                       # bf16 input slab
    w_blk = _round_up(C2o_tot, 16) * _round_up(KKC, 128) * 2  # bf16 weight
    o_blk = _round_up(C2o_tot, 8) * _round_up(P, 128) * 4     # f32 output
    scr = _round_up(KKC, 16) * _round_up(P, 128) * 2          # bf16 im2col scratch
    return 2 * (x_blk + w_blk + o_blk) + scr


def _pick_row_tile(QH, N, budget, geom):
    """Largest TQ whose footprint fits the budget; keep >=2 grid steps if N==1."""
    best = 1
    for tq in range(1, QH + 1):
        if _vmem_bytes(tq, **geom) <= budget:
            best = tq
    if N == 1 and QH > 1 and -(-QH // best) < 2:
        best = (QH + 1) // 2                      # split rows -> 2 parallel steps
    return best


def _phase_matmul_kernel(x_ref, w_ref, o_ref, p_ref, *, U, C2i, WP, P):
    """One (batch, row-slab) grid step.

    x_ref: (1, 1, C2i, L)      bf16  channel-major, spatially-flattened row slab
    w_ref: (C2o_tot, KKC)      bf16  transposed phase-major complex block weight
    o_ref: (1, 1, C2o_tot, P)  f32   phase-major output tile, pixels on lanes
    p_ref: (KKC, P)            bf16  im2col scratch, pixels on lanes
    """
    # im2col by pure lane shifts: for flat pixel j = q_r*WP + q_c, tap (uh, uw)
    # lives at flat column j + uh*WP + uw of the slab.  Each store is one
    # lane-dense (C2i, P) strip; no per-tap reshape / transpose is needed.
    t = 0
    for uh in range(U):                       # static unroll, U*U small
        for uw in range(U):
            off = uh * WP + uw                # static python int
            p_ref[t * C2i:(t + 1) * C2i, :] = x_ref[0, 0, :, off:off + P]
            t += 1

    # Single MXU matmul: bf16 x bf16 -> f32 accumulation, pixels on the lane
    # (minor) dim so the output write is an unmasked lane-dense store.
    res = jnp.dot(w_ref[...], p_ref[...], preferred_element_type=jnp.float32)
    o_ref[0, 0] = jnp.nan_to_num(res).astype(o_ref.dtype)


def complex_conv_transpose_2d(x, w_re, w_im, *, stride, padding):
    """x: complex64 (N, Cin, H, W); w_*: float32 (Cin, Cout, K, K) (torch layout)."""
    N, Cin, H, W = x.shape
    Cin_w, Cout, K, K2 = w_re.shape
    assert Cin_w == Cin and K == K2 and w_im.shape == w_re.shape
    s, p = int(stride), int(padding)
    assert s >= 1 and 0 <= p <= K - 1, "padding > kernel_size-1 not supported"

    OH = (H - 1) * s - 2 * p + K
    OW = (W - 1) * s - 2 * p + K
    pad_c = K - 1 - p                        # pad of the equivalent stride-1 correlation

    # ---- static sub-pixel (phase) geometry ----
    QH, QW = -(-OH // s), -(-OW // s)        # per-phase output rows / cols
    k0 = [(pad_c - ph) % s for ph in range(s)]
    n_taps = [(-(-(K - k) // s)) if k < K else 0 for k in k0]
    base = [(ph + k0[ph] - pad_c) // s for ph in range(s)]
    active = [ph for ph in range(s) if n_taps[ph] > 0]
    B = min(base[ph] for ph in active)
    U = max(base[ph] + n_taps[ph] for ph in active) - B     # unified window extent

    C2i, C2o = 2 * Cin, 2 * Cout
    S2 = s * s
    KKC = U * U * C2i
    C2o_tot = S2 * C2o
    WP = QW + U - 1

    # ---- row-tile choice: largest tile that fits the per-chip VMEM budget ----
    try:
        vmem_cap = int(pltpu.get_tpu_info().vmem_capacity_bytes)
    except Exception:                         # conservative fallback (v7x-sized)
        vmem_cap = 64 << 20
    budget = int(vmem_cap * 0.70)             # leave headroom for compiler scratch
    geom = dict(U=U, WP=WP, C2i=C2i, KKC=KKC, C2o_tot=C2o_tot)
    TQ = _pick_row_tile(QH, N, budget, geom)
    R = -(-QH // TQ)
    QHp = R * TQ                              # padded phase-rows (extra rows cropped)
    TQU = TQ + U - 1
    HP = QHp + U - 1
    P = TQ * WP                               # pixels (lane dim) per grid step
    L = _slab_cols(TQ, U, WP)

    # ---- input prep: bf16, channel-major, halo pad, overlapping row slabs,
    #      spatial dims flattened so the in-kernel im2col is pure lane shifts ----
    xs = jnp.concatenate([jnp.real(x), jnp.imag(x)], axis=1).astype(jnp.bfloat16)
    pb_h, pa_h = max(0, -B), max(0, (QHp - 1 + B + U - 1) - (H - 1))
    pb_w, pa_w = max(0, -B), max(0, (QW - 1 + B + U - 1) - (W - 1))
    xs = jnp.pad(xs, ((0, 0), (0, 0), (pb_h, pa_h), (pb_w, pa_w)))
    h0, w0 = B + pb_h, B + pb_w
    x_prep = xs[:, :, h0:h0 + HP, w0:w0 + WP]                # (N, 2Cin, HP, WP)
    slabs = [x_prep[:, :, r * TQ:r * TQ + TQU, :] for r in range(R)]
    x_slab = jnp.stack(slabs, axis=1)                        # (N, R, 2Cin, TQU, WP)
    x_flat = x_slab.reshape(N, R, C2i, TQU * WP)
    x_flat = jnp.pad(x_flat, ((0, 0), (0, 0), (0, 0), (0, L - TQU * WP)))

    # ---- unified-window, phase-major complex block weight: (s*s*2Cout, U*U*2Cin) ----
    def flip_taps(w):  # torch (Cin, Cout, K, K) -> flipped, tap-major (K, K, Cin, Cout)
        return jnp.flip(jnp.transpose(w, (2, 3, 0, 1)), axis=(0, 1))

    wf_re, wf_im = flip_taps(w_re), flip_taps(w_im)
    wf_blk = jnp.concatenate(
        [jnp.concatenate([wf_re, wf_im], axis=3),
         jnp.concatenate([-wf_im, wf_re], axis=3)], axis=2)          # (K, K, 2Cin, 2Cout)
    zero = jnp.zeros((C2i, C2o), wf_blk.dtype)
    rows = []
    for uh in range(U):
        for uw in range(U):
            cols = []
            for ph in range(s):
                kh = (uh + B) * s + pad_c - ph
                for pw in range(s):
                    kw = (uw + B) * s + pad_c - pw
                    cols.append(wf_blk[kh, kw]
                                if (0 <= kh < K and 0 <= kw < K) else zero)
            rows.append(jnp.concatenate(cols, axis=1))               # (2Cin, s*s*2Cout)
    w_big = jnp.concatenate(rows, axis=0)                            # (KKC, S2*2Cout)
    w_t = jnp.transpose(w_big).astype(jnp.bfloat16)                  # (S2*2Cout, KKC)

    # ---- Pallas kernel ----
    need = _vmem_bytes(TQ, **geom)
    vmem_limit = int(min(max(need + (2 << 20), 8 << 20), budget))

    kern = functools.partial(_phase_matmul_kernel, U=U, C2i=C2i, WP=WP, P=P)
    out = pl.pallas_call(
        kern,
        out_shape=jax.ShapeDtypeStruct((N, R, C2o_tot, P), jnp.float32),
        grid_spec=pltpu.PrefetchScalarGridSpec(
            num_scalar_prefetch=0,
            grid=(N, R),
            in_specs=[
                pl.BlockSpec((1, 1, C2i, L), lambda n, r: (n, r, 0, 0)),
                pl.BlockSpec((C2o_tot, KKC), lambda n, r: (0, 0)),
            ],
            out_specs=pl.BlockSpec((1, 1, C2o_tot, P), lambda n, r: (n, r, 0, 0)),
            scratch_shapes=[pltpu.VMEM((KKC, P), jnp.bfloat16)],
        ),
        compiler_params=pltpu.CompilerParams(
            dimension_semantics=("parallel", "parallel"),
            vmem_limit_bytes=vmem_limit,
        ),
    )(x_flat, w_t)

    # ---- unscramble: crop halo columns + phase pixel-shuffle back to NCHW complex ----
    out = out.reshape(N, R, s, s, 2, Cout, TQ, WP)[..., :QW]
    y = jnp.transpose(out, (0, 4, 5, 1, 6, 2, 7, 3))     # (N, 2, Cout, R, TQ, s, QW, s)
    y = y.reshape(N, 2, Cout, QHp * s, QW * s)[:, :, :, :OH, :OW]
    return (y[:, 0] + 1j * y[:, 1]).astype(jnp.complex64)


def _reference(x, w_re, w_im, stride, padding):
    """Pure-JAX reference using lax.conv_general_dilated (ConvTranspose2d math)."""
    K = w_re.shape[2]
    pad = K - 1 - padding
    dn = ('NCHW', 'OIHW', 'NCHW')

    def convT(inp, w):
        rhs = jnp.transpose(jnp.flip(w, axis=(2, 3)), (1, 0, 2, 3))  # (Cout, Cin, K, K)
        return jax.lax.conv_general_dilated(
            inp, rhs, window_strides=(1, 1),
            padding=[(pad, pad), (pad, pad)],
            lhs_dilation=(stride, stride), rhs_dilation=(1, 1),
            dimension_numbers=dn, precision=jax.lax.Precision.HIGHEST)

    xr, xi = jnp.real(x), jnp.imag(x)
    real = convT(xr, w_re) - convT(xi, w_im)
    imag = convT(xi, w_re) + convT(xr, w_im)
    return (jnp.nan_to_num(real) + 1j * jnp.nan_to_num(imag)).astype(jnp.complex64)


if __name__ == "__main__":
    N, Cin, Cout, H, W = 2, 4, 4, 16, 16
    K, stride, padding = 4, 2, 1

    key = jax.random.PRNGKey(0)
    k1, k2, k3, k4 = jax.random.split(key, 4)
    x_re = jax.random.normal(k1, (N, Cin, H, W), jnp.float32)
    x_im = jax.random.normal(k2, (N, Cin, H, W), jnp.float32)
    x = (x_re + 1j * x_im).astype(jnp.complex64)

    # deterministic ConvTranspose2d-style init: weight shape (Cin, Cout, K, K)
    bound = 1.0 / (Cin * K * K) ** 0.5
    w_re = jax.random.uniform(k3, (Cin, Cout, K, K), jnp.float32, -bound, bound)
    w_im = jax.random.uniform(k4, (Cin, Cout, K, K), jnp.float32, -bound, bound)

    fn = jax.jit(functools.partial(complex_conv_transpose_2d,
                                   stride=stride, padding=padding))
    y = jax.block_until_ready(fn(x, w_re, w_im))

    OH = (H - 1) * stride - 2 * padding + K
    assert y.shape == (N, Cout, OH, OH) and y.dtype == jnp.complex64

    y_ref = _reference(x, w_re, w_im, stride, padding)
    err = float(jnp.max(jnp.abs(y - y_ref)))
    # bf16 MXU operands with f32 accumulation: max abs error here is O(1e-3).
    assert err < 1e-2, f"mismatch vs reference: max abs err {err}"

    print("KERNEL_OK")
</pallas_src>

<mosaic_0001>
module attributes {stable_mosaic.version = 11 : i64} {
  func.func @_phase_matmul_kernel(%arg0: i32, %arg1: i32, %arg2: memref<1x1x8x384xbf16, #tpu.memory_space<vmem>>, %arg3: memref<32x72xbf16, #tpu.memory_space<vmem>>, %arg4: memref<1x1x32x288xf32, #tpu.memory_space<vmem>>, %arg5: memref<72x288xbf16, #tpu.memory_space<vmem>>) attributes {dimension_semantics = [#tpu.dimension_semantics<parallel>, #tpu.dimension_semantics<parallel>], iteration_bounds = array<i64: 2, 1>, scalar_prefetch = 0 : i64, scratch_operands = 1 : i64, tpu.core_type = #tpu.core_type<tc>, window_params = [{transform_indices = @transform_0, window_bounds = array<i64: 1, 1, 8, 384>}, {pipeline_mode = #tpu.pipeline_mode<synchronous>, transform_indices = @transform_1, window_bounds = array<i64: 32, 72>}, {transform_indices = @transform_2, window_bounds = array<i64: 1, 1, 32, 288>}]} {
    %c0 = arith.constant 0 : index
    %c0_0 = arith.constant 0 : index
    %c0_1 = arith.constant 0 : index
    %c0_2 = arith.constant 0 : index
    %0 = vector.load %arg2[%c0, %c0_0, %c0_1, %c0_2] : memref<1x1x8x384xbf16, #tpu.memory_space<vmem>>, vector<1x1x8x288xbf16>
    %1 = vector.shape_cast %0 : vector<1x1x8x288xbf16> to vector<8x288xbf16>
    %c0_3 = arith.constant 0 : index
    %c0_4 = arith.constant 0 : index
    %2 = vector.load %arg5[%c0_3, %c0_4] : memref<72x288xbf16, #tpu.memory_space<vmem>>, vector<8x288xbf16>
    tpu.vector_store %arg5[%c0_3, %c0_4], %1 {strides = array<i32>} : memref<72x288xbf16, #tpu.memory_space<vmem>>, vector<8x288xbf16>,
    %c0_5 = arith.constant 0 : index
    %c0_6 = arith.constant 0 : index
    %c0_7 = arith.constant 0 : index
    %c1 = arith.constant 1 : index
    %3 = vector.load %arg2[%c0_5, %c0_6, %c0_7, %c1] : memref<1x1x8x384xbf16, #tpu.memory_space<vmem>>, vector<1x1x8x288xbf16>
    %4 = vector.shape_cast %3 : vector<1x1x8x288xbf16> to vector<8x288xbf16>
    %c8 = arith.constant 8 : index
    %c0_8 = arith.constant 0 : index
    %5 = vector.load %arg5[%c8, %c0_8] : memref<72x288xbf16, #tpu.memory_space<vmem>>, vector<8x288xbf16>
    tpu.vector_store %arg5[%c8, %c0_8], %4 {strides = array<i32>} : memref<72x288xbf16, #tpu.memory_space<vmem>>, vector<8x288xbf16>,
    %c0_9 = arith.constant 0 : index
    %c0_10 = arith.constant 0 : index
    %c0_11 = arith.constant 0 : index
    %c2 = arith.constant 2 : index
    %6 = vector.load %arg2[%c0_9, %c0_10, %c0_11, %c2] : memref<1x1x8x384xbf16, #tpu.memory_space<vmem>>, vector<1x1x8x288xbf16>
    %7 = vector.shape_cast %6 : vector<1x1x8x288xbf16> to vector<8x288xbf16>
    %c16 = arith.constant 16 : index
    %c0_12 = arith.constant 0 : index
    %8 = vector.load %arg5[%c16, %c0_12] : memref<72x288xbf16, #tpu.memory_space<vmem>>, vector<8x288xbf16>
    tpu.vector_store %arg5[%c16, %c0_12], %7 {strides = array<i32>} : memref<72x288xbf16, #tpu.memory_space<vmem>>, vector<8x288xbf16>,
    %c0_13 = arith.constant 0 : index
    %c0_14 = arith.constant 0 : index
    %c0_15 = arith.constant 0 : index
    %c18 = arith.constant 18 : index
    %9 = vector.load %arg2[%c0_13, %c0_14, %c0_15, %c18] : memref<1x1x8x384xbf16, #tpu.memory_space<vmem>>, vector<1x1x8x288xbf16>
    %10 = vector.shape_cast %9 : vector<1x1x8x288xbf16> to vector<8x288xbf16>
    %c24 = arith.constant 24 : index
    %c0_16 = arith.constant 0 : index
    %11 = vector.load %arg5[%c24, %c0_16] : memref<72x288xbf16, #tpu.memory_space<vmem>>, vector<8x288xbf16>
    tpu.vector_store %arg5[%c24, %c0_16], %10 {strides = array<i32>} : memref<72x288xbf16, #tpu.memory_space<vmem>>, vector<8x288xbf16>,
    %c0_17 = arith.constant 0 : index
    %c0_18 = arith.constant 0 : index
    %c0_19 = arith.constant 0 : index
    %c19 = arith.constant 19 : index
    %12 = vector.load %arg2[%c0_17, %c0_18, %c0_19, %c19] : memref<1x1x8x384xbf16, #tpu.memory_space<vmem>>, vector<1x1x8x288xbf16>
    %13 = vector.shape_cast %12 : vector<1x1x8x288xbf16> to vector<8x288xbf16>
    %c32 = arith.constant 32 : index
    %c0_20 = arith.constant 0 : index
    %14 = vector.load %arg5[%c32, %c0_20] : memref<72x288xbf16, #tpu.memory_space<vmem>>, vector<8x288xbf16>
    tpu.vector_store %arg5[%c32, %c0_20], %13 {strides = array<i32>} : memref<72x288xbf16, #tpu.memory_space<vmem>>, vector<8x288xbf16>,
    %c0_21 = arith.constant 0 : index
    %c0_22 = arith.constant 0 : index
    %c0_23 = arith.constant 0 : index
    %c20 = arith.constant 20 : index
    %15 = vector.load %arg2[%c0_21, %c0_22, %c0_23, %c20] : memref<1x1x8x384xbf16, #tpu.memory_space<vmem>>, vector<1x1x8x288xbf16>
    %16 = vector.shape_cast %15 : vector<1x1x8x288xbf16> to vector<8x288xbf16>
    %c40 = arith.constant 40 : index
    %c0_24 = arith.constant 0 : index
    %17 = vector.load %arg5[%c40, %c0_24] : memref<72x288xbf16, #tpu.memory_space<vmem>>, vector<8x288xbf16>
    tpu.vector_store %arg5[%c40, %c0_24], %16 {strides = array<i32>} : memref<72x288xbf16, #tpu.memory_space<vmem>>, vector<8x288xbf16>,
    %c0_25 = arith.constant 0 : index
    %c0_26 = arith.constant 0 : index
    %c0_27 = arith.constant 0 : index
    %c36 = arith.constant 36 : index
    %18 = vector.load %arg2[%c0_25, %c0_26, %c0_27, %c36] : memref<1x1x8x384xbf16, #tpu.memory_space<vmem>>, vector<1x1x8x288xbf16>
    %19 = vector.shape_cast %18 : vector<1x1x8x288xbf16> to vector<8x288xbf16>
    %c48 = arith.constant 48 : index
    %c0_28 = arith.constant 0 : index
    %20 = vector.load %arg5[%c48, %c0_28] : memref<72x288xbf16, #tpu.memory_space<vmem>>, vector<8x288xbf16>
    tpu.vector_store %arg5[%c48, %c0_28], %19 {strides = array<i32>} : memref<72x288xbf16, #tpu.memory_space<vmem>>, vector<8x288xbf16>,
    %c0_29 = arith.constant 0 : index
    %c0_30 = arith.constant 0 : index
    %c0_31 = arith.constant 0 : index
    %c37 = arith.constant 37 : index
    %21 = vector.load %arg2[%c0_29, %c0_30, %c0_31, %c37] : memref<1x1x8x384xbf16, #tpu.memory_space<vmem>>, vector<1x1x8x288xbf16>
    %22 = vector.shape_cast %21 : vector<1x1x8x288xbf16> to vector<8x288xbf16>
    %c56 = arith.constant 56 : index
    %c0_32 = arith.constant 0 : index
    %23 = vector.load %arg5[%c56, %c0_32] : memref<72x288xbf16, #tpu.memory_space<vmem>>, vector<8x288xbf16>
    tpu.vector_store %arg5[%c56, %c0_32], %22 {strides = array<i32>} : memref<72x288xbf16, #tpu.memory_space<vmem>>, vector<8x288xbf16>,
    %c0_33 = arith.constant 0 : index
    %c0_34 = arith.constant 0 : index
    %c0_35 = arith.constant 0 : index
    %c38 = arith.constant 38 : index
    %24 = vector.load %arg2[%c0_33, %c0_34, %c0_35, %c38] : memref<1x1x8x384xbf16, #tpu.memory_space<vmem>>, vector<1x1x8x288xbf16>
    %25 = vector.shape_cast %24 : vector<1x1x8x288xbf16> to vector<8x288xbf16>
    %c64 = arith.constant 64 : index
    %c0_36 = arith.constant 0 : index
    %26 = vector.load %arg5[%c64, %c0_36] : memref<72x288xbf16, #tpu.memory_space<vmem>>, vector<8x288xbf16>
    tpu.vector_store %arg5[%c64, %c0_36], %25 {strides = array<i32>} : memref<72x288xbf16, #tpu.memory_space<vmem>>, vector<8x288xbf16>,
    %c0_37 = arith.constant 0 : index
    %c0_38 = arith.constant 0 : index
    %27 = vector.load %arg3[%c0_37, %c0_38] : memref<32x72xbf16, #tpu.memory_space<vmem>>, vector<32x72xbf16>
    %c0_39 = arith.constant 0 : index
    %c0_40 = arith.constant 0 : index
    %28 = vector.load %arg5[%c0_39, %c0_40] : memref<72x288xbf16, #tpu.memory_space<vmem>>, vector<72x288xbf16>
    %cst = arith.constant dense<0.000000e+00> : vector<32x288xf32>
    %29 = tpu.matmul %27, %28, %cst {dimension_numbers = #tpu.dot_dimension_numbers<[1], [0], [0], [1], [0, 0, 1, 1], [], []>} : vector<32x72xbf16>, vector<72x288xbf16>, vector<32x288xf32> -> vector<32x288xf32>
    %30 = arith.cmpf one, %29, %29 : vector<32x288xf32>
    %cst_41 = arith.constant 0.000000e+00 : f32
    %31 = vector.broadcast %cst_41 : f32 to vector<32x288xf32>
    %32 = arith.select %30, %31, %29 : vector<32x288xi1>, vector<32x288xf32>
    %cst_42 = arith.constant 0x7F800000 : f32
    %33 = vector.broadcast %cst_42 : f32 to vector<32x288xf32>
    %34 = arith.cmpf oeq, %32, %33 : vector<32x288xf32>
    %cst_43 = arith.constant 3.40282347E+38 : f32
    %35 = vector.broadcast %cst_43 : f32 to vector<32x288xf32>
    %36 = arith.select %34, %35, %32 : vector<32x288xi1>, vector<32x288xf32>
    %cst_44 = arith.constant 0xFF800000 : f32
    %37 = vector.broadcast %cst_44 : f32 to vector<32x288xf32>
    %38 = arith.cmpf oeq, %36, %37 : vector<32x288xf32>
    %cst_45 = arith.constant -3.40282347E+38 : f32
    %39 = vector.broadcast %cst_45 : f32 to vector<32x288xf32>
    %40 = arith.select %38, %39, %36 : vector<32x288xi1>, vector<32x288xf32>
    %c0_46 = arith.constant 0 : index
    %c0_47 = arith.constant 0 : index
    %c0_48 = arith.constant 0 : index
    %c0_49 = arith.constant 0 : index
    %41 = vector.load %arg4[%c0_46, %c0_47, %c0_48, %c0_49] : memref<1x1x32x288xf32, #tpu.memory_space<vmem>>, vector<1x1x32x288xf32>
    %42 = vector.shape_cast %41 : vector<1x1x32x288xf32> to vector<32x288xf32>
    %43 = vector.shape_cast %40 : vector<32x288xf32> to vector<1x1x32x288xf32>
    tpu.vector_store %arg4[%c0_46, %c0_47, %c0_48, %c0_49], %43 {strides = array<i32>} : memref<1x1x32x288xf32, #tpu.memory_space<vmem>>, vector<1x1x32x288xf32>,
    return
  }
  func.func @transform_0(%arg0: i32, %arg1: i32) -> (i32, i32, i32, i32) {
    %c0_i32 = arith.constant 0 : i32
    %c0_i32_0 = arith.constant 0 : i32
    %c0_i32_1 = arith.constant 0 : i32
    return %arg0, %arg1, %c0_i32, %c0_i32_0 : i32, i32, i32, i32
  }
  func.func @transform_1(%arg0: i32, %arg1: i32) -> (i32, i32) {
    %c0_i32 = arith.constant 0 : i32
    %c0_i32_0 = arith.constant 0 : i32
    %c0_i32_1 = arith.constant 0 : i32
    return %c0_i32, %c0_i32_0 : i32, i32
  }
  func.func @transform_2(%arg0: i32, %arg1: i32) -> (i32, i32, i32, i32) {
    %c0_i32 = arith.constant 0 : i32
    %c0_i32_0 = arith.constant 0 : i32
    %c0_i32_1 = arith.constant 0 : i32
    return %arg0, %arg1, %c0_i32, %c0_i32_0 : i32, i32, i32, i32
  }
}

</mosaic_0001>

<bundles_post_ra>
// kernel: custom-call.1
= control target key start
LH: loop header
LB: loop body
LE: loop exit
PB: predicated region body
PF: predicated region fallthrough
CT: control target
= control target key end

     0   :  { %s51_s0 = inlined_call_operand.hbm [shape: c64[2,4,16,16], index: 0, kind: input, shape index: {}]   ;;  %s52_s1 = inlined_call_operand.vmem [shape: f32[2,4,16,16], index: 1, kind: output, shape index: {}]  }
   0x1   :  { %s2_s8 = scalar_lea.hbm %s51_s0, 2048 }
   0x2   :  { %3 = vsyncpa [#allocation0], 0  ;;  %s4_s11 = sshll.u32 %s52_s1, 4  ;;  %s5_s11 = int_to_ptr.vmem [resolvable:$true] %s4_s11 }
   0x3   :  { %s20_s12 = scalar_lea.vmem %s5_s11, 2048  ;;  %p25_p1 = scmp.lt.s32.totalorder %s5_s11, %s5_s11 }
   0x4   :  { %p21_p0 = scmp.ne.s32.totalorder %s5_s11, %s20_s12  ;;  %p26_p2 = scmp.lt.s32.totalorder %s20_s12, %s20_s12 }
   0x6   :  { %p27_p3 = por %p26_p2, %p25_p1 }
   0x8   :  { %p28_p4 = pnand %p27_p3, %p21_p0 }
   0xa   :  { %31 = shalt.err (!%p28_p4)  }
   0xb   :  { %7 = dma.hbm_to_vmem [thread:$0]  %s2_s8, 2048, %s5_s11, [#allocation0] }
   0xc   :  { %33 = dma.done.wait [#allocation0], 2048  }
   0xd   :  { %34 = vsyncadd [#allocation0], 4294965248 }
   0xe   :  { %9 = vsyncpa [#allocation0], 1 }

// kernel: custom-call
= control target key start
LH: loop header
LB: loop body
LE: loop exit
PB: predicated region body
PF: predicated region fallthrough
CT: control target
= control target key end

     0   :  { %2 = vsyncpa [#allocation0], 0  ;;  %s47_s0 = inlined_call_operand.hbm [shape: c64[2,4,16,16], index: 0, kind: input, shape index: {}]   ;;  %s48_s1 = inlined_call_operand.vmem [shape: f32[2,4,16,16], index: 1, kind: output, shape index: {}]  }
   0x1   :  { %s3_s8 = sshll.u32 %s48_s1, 4  ;;  %s4_s8 = int_to_ptr.vmem [resolvable:$true] %s3_s8 }
   0x2   :  { %s17_s9 = scalar_lea.vmem %s4_s8, 2048  ;;  %p22_p1 = scmp.lt.s32.totalorder %s4_s8, %s4_s8 }
   0x3   :  { %p18_p0 = scmp.ne.s32.totalorder %s4_s8, %s17_s9  ;;  %p23_p2 = scmp.lt.s32.totalorder %s17_s9, %s17_s9 }
   0x5   :  { %p24_p3 = por %p23_p2, %p22_p1 }
   0x7   :  { %p25_p4 = pnand %p24_p3, %p18_p0 }
   0x9   :  { %28 = shalt.err (!%p25_p4)  }
   0xa   :  { %6 = dma.hbm_to_vmem [thread:$0]  %s47_s0, 2048, %s4_s8, [#allocation0] }
   0xb   :  { %29 = dma.done.wait [#allocation0], 2048  }
   0xc   :  { %30 = vsyncadd [#allocation0], 4294965248 }
   0xd   :  { %8 = vsyncpa [#allocation0], 1 }

// kernel: custom-call.2
= control target key start
LH: loop header
LB: loop body
LE: loop exit
PB: predicated region body
PF: predicated region fallthrough
CT: control target
= control target key end

     0   :  { %s6412_s0 = inlined_call_operand.vmem [shape: f32[2,4,32,32], index: 0, kind: input, shape index: {}]   ;;  %s6413_s2 = inlined_call_operand.vmem [shape: c64[2,4,32,32], index: 2, kind: output, shape index: {}]   ;;  %s6414_s1 = inlined_call_operand.vmem [shape: f32[2,4,32,32], index: 1, kind: input, shape index: {}]  }
   0x1   :  { %v5_v0 = vld [vmem:[%s6412_s0] sm:$0xff]  ;;  %v2304_v1 = vld [vmem:[%s6412_s0 + $0x8] sm:$0xff]  ;;  %v2306_v2 = vld [vmem:[%s6412_s0 + $0x10] sm:$0xff] }
   0x2   :  { %6 = vst [vmem:[%s6413_s2] sm:$0xff] %v5_v0  ;;  %2305 = vst [vmem:[%s6413_s2 + $0x8] sm:$0xff] %v2304_v1  ;;  %v2308_v3 = vld [vmem:[%s6412_s0 + $0x18] sm:$0xff]  ;;  %v2310_v4 = vld [vmem:[%s6412_s0 + $0x20] sm:$0xff] }
   0x3   :  { %2307 = vst [vmem:[%s6413_s2 + $0x10] sm:$0xff] %v2306_v2  ;;  %v2312_v5 = vld [vmem:[%s6412_s0 + $0x28] sm:$0xff]  ;;  %2309 = vst [vmem:[%s6413_s2 + $0x18] sm:$0xff] %v2308_v3  ;;  %v2314_v6 = vld [vmem:[%s6412_s0 + $0x30] sm:$0xff] }
   0x4   :  { %2311 = vst [vmem:[%s6413_s2 + $0x20] sm:$0xff] %v2310_v4  ;;  %2313 = vst [vmem:[%s6413_s2 + $0x28] sm:$0xff] %v2312_v5  ;;  %v2316_v7 = vld [vmem:[%s6412_s0 + $0x38] sm:$0xff]  ;;  %v2318_v8 = vld [vmem:[%s6412_s0 + $0x40] sm:$0xff] }
   0x5   :  { %2315 = vst [vmem:[%s6413_s2 + $0x30] sm:$0xff] %v2314_v6  ;;  %2317 = vst [vmem:[%s6413_s2 + $0x38] sm:$0xff] %v2316_v7  ;;  %v2320_v9 = vld [vmem:[%s6412_s0 + $0x48] sm:$0xff]  ;;  %v2322_v10 = vld [vmem:[%s6412_s0 + $0x50] sm:$0xff] }
   0x6   :  { %2319 = vst [vmem:[%s6413_s2 + $0x40] sm:$0xff] %v2318_v8  ;;  %v2324_v11 = vld [vmem:[%s6412_s0 + $0x58] sm:$0xff]  ;;  %2321 = vst [vmem:[%s6413_s2 + $0x48] sm:$0xff] %v2320_v9  ;;  %v2326_v12 = vld [vmem:[%s6412_s0 + $0x60] sm:$0xff] }
   0x7   :  { %2323 = vst [vmem:[%s6413_s2 + $0x50] sm:$0xff] %v2322_v10  ;;  %2325 = vst [vmem:[%s6413_s2 + $0x58] sm:$0xff] %v2324_v11  ;;  %v2328_v13 = vld [vmem:[%s6412_s0 + $0x68] sm:$0xff]  ;;  %v2330_v14 = vld [vmem:[%s6412_s0 + $0x70] sm:$0xff] }
   0x8   :  { %2327 = vst [vmem:[%s6413_s2 + $0x60] sm:$0xff] %v2326_v12  ;;  %2329 = vst [vmem:[%s6413_s2 + $0x68] sm:$0xff] %v2328_v13  ;;  %v2332_v15 = vld [vmem:[%s6412_s0 + $0x78] sm:$0xff]  ;;  %v2334_v16 = vld [vmem:[%s6412_s0 + $0x80] sm:$0xff] }
   0x9   :  { %2331 = vst [vmem:[%s6413_s2 + $0x70] sm:$0xff] %v2330_v14  ;;  %v2336_v17 = vld [vmem:[%s6412_s0 + $0x88] sm:$0xff]  ;;  %2333 = vst [vmem:[%s6413_s2 + $0x78] sm:$0xff] %v2332_v15  ;;  %v2338_v18 = vld [vmem:[%s6412_s0 + $0x90] sm:$0xff] }
   0xa   :  { %2335 = vst [vmem:[%s6413_s2 + $0x80] sm:$0xff] %v2334_v16  ;;  %2337 = vst [vmem:[%s6413_s2 + $0x88] sm:$0xff] %v2336_v17  ;;  %v2340_v19 = vld [vmem:[%s6412_s0 + $0x98] sm:$0xff]  ;;  %v2342_v20 = vld [vmem:[%s6412_s0 + $0xa0] sm:$0xff] }
   0xb   :  { %2339 = vst [vmem:[%s6413_s2 + $0x90] sm:$0xff] %v2338_v18  ;;  %2341 = vst [vmem:[%s6413_s2 + $0x98] sm:$0xff] %v2340_v19  ;;  %v2344_v21 = vld [vmem:[%s6412_s0 + $0xa8] sm:$0xff]  ;;  %v2346_v22 = vld [vmem:[%s6412_s0 + $0xb0] sm:$0xff] }
   0xc   :  { %2343 = vst [vmem:[%s6413_s2 + $0xa0] sm:$0xff] %v2342_v20  ;;  %v2348_v23 = vld [vmem:[%s6412_s0 + $0xb8] sm:$0xff]  ;;  %2345 = vst [vmem:[%s6413_s2 + $0xa8] sm:$0xff] %v2344_v21  ;;  %v2350_v24 = vld [vmem:[%s6412_s0 + $0xc0] sm:$0xff] }
   0xd   :  { %2347 = vst [vmem:[%s6413_s2 + $0xb0] sm:$0xff] %v2346_v22  ;;  %2349 = vst [vmem:[%s6413_s2 + $0xb8] sm:$0xff] %v2348_v23  ;;  %v2352_v25 = vld [vmem:[%s6412_s0 + $0xc8] sm:$0xff]  ;;  %v2354_v26 = vld [vmem:[%s6412_s0 + $0xd0] sm:$0xff] }
   0xe   :  { %2351 = vst [vmem:[%s6413_s2 + $0xc0] sm:$0xff] %v2350_v24  ;;  %2353 = vst [vmem:[%s6413_s2 + $0xc8] sm:$0xff] %v2352_v25  ;;  %v2356_v27 = vld [vmem:[%s6412_s0 + $0xd8] sm:$0xff]  ;;  %v2358_v28 = vld [vmem:[%s6412_s0 + $0xe0] sm:$0xff] }
   0xf   :  { %2355 = vst [vmem:[%s6413_s2 + $0xd0] sm:$0xff] %v2354_v26  ;;  %v2360_v29 = vld [vmem:[%s6412_s0 + $0xe8] sm:$0xff]  ;;  %2357 = vst [vmem:[%s6413_s2 + $0xd8] sm:$0xff] %v2356_v27  ;;  %v2362_v30 = vld [vmem:[%s6412_s0 + $0xf0] sm:$0xff] }
  0x10   :  { %2359 = vst [vmem:[%s6413_s2 + $0xe0] sm:$0xff] %v2358_v28  ;;  %2361 = vst [vmem:[%s6413_s2 + $0xe8] sm:$0xff] %v2360_v29  ;;  %v2364_v31 = vld [vmem:[%s6412_s0 + $0xf8] sm:$0xff]  ;;  %v2366_v32 = vld [vmem:[%s6412_s0 + $0x100] sm:$0xff] }
  0x11   :  { %2363 = vst [vmem:[%s6413_s2 + $0xf0] sm:$0xff] %v2362_v30  ;;  %2365 = vst [vmem:[%s6413_s2 + $0xf8] sm:$0xff] %v2364_v31  ;;  %v2368_v33 = vld [vmem:[%s6412_s0 + $0x108] sm:$0xff]  ;;  %v2370_v34 = vld [vmem:[%s6412_s0 + $0x110] sm:$0xff] }
  0x12   :  { %2367 = vst [vmem:[%s6413_s2 + $0x100] sm:$0xff] %v2366_v32  ;;  %v2372_v35 = vld [vmem:[%s6412_s0 + $0x118] sm:$0xff]  ;;  %2369 = vst [vmem:[%s6413_s2 + $0x108] sm:$0xff] %v2368_v33  ;;  %v2374_v36 = vld [vmem:[%s6412_s0 + $0x120] sm:$0xff] }
  0x13   :  { %2371 = vst [vmem:[%s6413_s2 + $0x110] sm:$0xff] %v2370_v34  ;;  %2373 = vst [vmem:[%s6413_s2 + $0x118] sm:$0xff] %v2372_v35  ;;  %v2376_v37 = vld [vmem:[%s6412_s0 + $0x128] sm:$0xff]  ;;  %v2378_v38 = vld [vmem:[%s6412_s0 + $0x130] sm:$0xff] }
  0x14   :  { %2375 = vst [vmem:[%s6413_s2 + $0x120] sm:$0xff] %v2374_v36  ;;  %2377 = vst [vmem:[%s6413_s2 + $0x128] sm:$0xff] %v2376_v37  ;;  %v2380_v39 = vld [vmem:[%s6412_s0 + $0x138] sm:$0xff]  ;;  %v2382_v40 = vld [vmem:[%s6412_s0 + $0x140] sm:$0xff] }
  0x15   :  { %2379 = vst [vmem:[%s6413_s2 + $0x130] sm:$0xff] %v2378_v38  ;;  %v2384_v41 = vld [vmem:[%s6412_s0 + $0x148] sm:$0xff]  ;;  %2381 = vst [vmem:[%s6413_s2 + $0x138] sm:$0xff] %v2380_v39  ;;  %v2386_v42 = vld [vmem:[%s6412_s0 + $0x150] sm:$0xff] }
  0x16   :  { %2383 = vst [vmem:[%s6413_s2 + $0x140] sm:$0xff] %v2382_v40  ;;  %2385 = vst [vmem:[%s6413_s2 + $0x148] sm:$0xff] %v2384_v41  ;;  %v2388_v43 = vld [vmem:[%s6412_s0 + $0x158] sm:$0xff]  ;;  %v2390_v44 = vld [vmem:[%s6412_s0 + $0x160] sm:$0xff] }
  0x17   :  { %2387 = vst [vmem:[%s6413_s2 + $0x150] sm:$0xff] %v2386_v42  ;;  %2389 = vst [vmem:[%s6413_s2 + $0x158] sm:$0xff] %v2388_v43  ;;  %v2392_v45 = vld [vmem:[%s6412_s0 + $0x168] sm:$0xff]  ;;  %v2394_v46 = vld [vmem:[%s6412_s0 + $0x170] sm:$0xff] }
  0x18   :  { %2391 = vst [vmem:[%s6413_s2 + $0x160] sm:$0xff] %v2390_v44  ;;  %v2396_v47 = vld [vmem:[%s6412_s0 + $0x178] sm:$0xff]  ;;  %2393 = vst [vmem:[%s6413_s2 + $0x168] sm:$0xff] %v2392_v45  ;;  %v2398_v48 = vld [vmem:[%s6412_s0 + $0x180] sm:$0xff] }
  0x19   :  { %2395 = vst [vmem:[%s6413_s2 + $0x170] sm:$0xff] %v2394_v46  ;;  %2397 = vst [vmem:[%s6413_s2 + $0x178] sm:$0xff] %v2396_v47  ;;  %v2400_v49 = vld [vmem:[%s6412_s0 + $0x188] sm:$0xff]  ;;  %v2402_v50 = vld [vmem:[%s6412_s0 + $0x190] sm:$0xff] }
  0x1a   :  { %2399 = vst [vmem:[%s6413_s2 + $0x180] sm:$0xff] %v2398_v48  ;;  %2401 = vst [vmem:[%s6413_s2 + $0x188] sm:$0xff] %v2400_v49  ;;  %v2404_v51 = vld [vmem:[%s6412_s0 + $0x198] sm:$0xff]  ;;  %v2406_v52 = vld [vmem:[%s6412_s0 + $0x1a0] sm:$0xff] }
  0x1b   :  { %2403 = vst [vmem:[%s6413_s2 + $0x190] sm:$0xff] %v2402_v50  ;;  %v2408_v53 = vld [vmem:[%s6412_s0 + $0x1a8] sm:$0xff]  ;;  %2405 = vst [vmem:[%s6413_s2 + $0x198] sm:$0xff] %v2404_v51  ;;  %v2410_v54 = vld [vmem:[%s6412_s0 + $0x1b0] sm:$0xff] }
  0x1c   :  { %2407 = vst [vmem:[%s6413_s2 + $0x1a0] sm:$0xff] %v2406_v52  ;;  %2409 = vst [vmem:[%s6413_s2 + $0x1a8] sm:$0xff] %v2408_v53  ;;  %v2412_v55 = vld [vmem:[%s6412_s0 + $0x1b8] sm:$0xff]  ;;  %v2414_v56 = vld [vmem:[%s6412_s0 + $0x1c0] sm:$0xff] }
  0x1d   :  { %2411 = vst [vmem:[%s6413_s2 + $0x1b0] sm:$0xff] %v2410_v54  ;;  %2413 = vst [vmem:[%s6413_s2 + $0x1b8] sm:$0xff] %v2412_v55  ;;  %v2416_v57 = vld [vmem:[%s6412_s0 + $0x1c8] sm:$0xff]  ;;  %v2418_v58 = vld [vmem:[%s6412_s0 + $0x1d0] sm:$0xff] }
  0x1e   :  { %2415 = vst [vmem:[%s6413_s2 + $0x1c0] sm:$0xff] %v2414_v56  ;;  %v2420_v59 = vld [vmem:[%s6412_s0 + $0x1d8] sm:$0xff]  ;;  %2417 = vst [vmem:[%s6413_s2 + $0x1c8] sm:$0xff] %v2416_v57  ;;  %v2422_v60 = vld [vmem:[%s6412_s0 + $0x1e0] sm:$0xff] }
  0x1f   :  { %2419 = vst [vmem:[%s6413_s2 + $0x1d0] sm:$0xff] %v2418_v58  ;;  %2421 = vst [vmem:[%s6413_s2 + $0x1d8] sm:$0xff] %v2420_v59  ;;  %v2424_v61 = vld [vmem:[%s6412_s0 + $0x1e8] sm:$0xff]  ;;  %v2426_v62 = vld [vmem:[%s6412_s0 + $0x1f0] sm:$0xff] }
  0x20   :  { %2423 = vst [vmem:[%s6413_s2 + $0x1e0] sm:$0xff] %v2422_v60  ;;  %2425 = vst [vmem:[%s6413_s2 + $0x1e8] sm:$0xff] %v2424_v61  ;;  %v2428_v63 = vld [vmem:[%s6412_s0 + $0x1f8] sm:$0xff]  ;;  %v2430_v0 = vld [vmem:[%s6412_s0 + $0x200] sm:$0xff] }
  0x21   :  { %2427 = vst [vmem:[%s6413_s2 + $0x1f0] sm:$0xff] %v2426_v62  ;;  %v2432_v1 = vld [vmem:[%s6412_s0 + $0x208] sm:$0xff]  ;;  %2429 = vst [vmem:[%s6413_s2 + $0x1f8] sm:$0xff] %v2428_v63  ;;  %v2434_v2 = vld [vmem:[%s6412_s0 + $0x210] sm:$0xff] }
  0x22   :  { %2431 = vst [vmem:[%s6413_s2 + $0x200] sm:$0xff] %v2430_v0  ;;  %2433 = vst [vmem:[%s6413_s2 + $0x208] sm:$0xff] %v2432_v1  ;;  %v2436_v3 = vld [vmem:[%s6412_s0 + $0x218] sm:$0xff]  ;;  %v2438_v4 = vld [vmem:[%s6412_s0 + $0x220] sm:$0xff] }
  0x23   :  { %2435 = vst [vmem:[%s6413_s2 + $0x210] sm:$0xff] %v2434_v2  ;;  %2437 = vst [vmem:[%s6413_s2 + $0x218] sm:$0xff] %v2436_v3  ;;  %v2440_v5 = vld [vmem:[%s6412_s0 + $0x228] sm:$0xff]  ;;  %v2442_v6 = vld [vmem:[%s6412_s0 + $0x230] sm:$0xff] }
  0x24   :  { %2439 = vst [vmem:[%s6413_s2 + $0x220] sm:$0xff] %v2438_v4  ;;  %v2444_v7 = vld [vmem:[%s6412_s0 + $0x238] sm:$0xff]  ;;  %2441 = vst [vmem:[%s6413_s2 + $0x228] sm:$0xff] %v2440_v5  ;;  %v2446_v8 = vld [vmem:[%s6412_s0 + $0x240] sm:$0xff] }
  0x25   :  { %2443 = vst [vmem:[%s6413_s2 + $0x230] sm:$0xff] %v2442_v6  ;;  %2445 = vst [vmem:[%s6413_s2 + $0x238] sm:$0xff] %v2444_v7  ;;  %v2448_v9 = vld [vmem:[%s6412_s0 + $0x248] sm:$0xff]  ;;  %v2450_v10 = vld [vmem:[%s6412_s0 + $0x250] sm:$0xff] }
  0x26   :  { %2447 = vst [vmem:[%s6413_s2 + $0x240] sm:$0xff] %v2446_v8  ;;  %2449 = vst [vmem:[%s6413_s2 + $0x248] sm:$0xff] %v2448_v9  ;;  %v2452_v11 = vld [vmem:[%s6412_s0 + $0x258] sm:$0xff]  ;;  %v2454_v12 = vld [vmem:[%s6412_s0 + $0x260] sm:$0xff] }
  0x27   :  { %2451 = vst [vmem:[%s6413_s2 + $0x250] sm:$0xff] %v2450_v10  ;;  %v2456_v13 = vld [vmem:[%s6412_s0 + $0x268] sm:$0xff]  ;;  %2453 = vst [vmem:[%s6413_s2 + $0x258] sm:$0xff] %v2452_v11  ;;  %v2458_v14 = vld [vmem:[%s6412_s0 + $0x270] sm:$0xff] }
  0x28   :  { %2455 = vst [vmem:[%s6413_s2 + $0x260] sm:$0xff] %v2454_v12  ;;  %2457 = vst [vmem:[%s6413_s2 + $0x268] sm:$0xff] %v2456_v13  ;;  %v2460_v15 = vld [vmem:[%s6412_s0 + $0x278] sm:$0xff]  ;;  %v2462_v16 = vld [vmem:[%s6412_s0 + $0x280] sm:$0xff] }
  0x29   :  { %2459 = vst [vmem:[%s6413_s2 + $0x270] sm:$0xff] %v2458_v14  ;;  %2461 = vst [vmem:[%s6413_s2 + $0x278] sm:$0xff] %v2460_v15  ;;  %v2464_v17 = vld [vmem:[%s6412_s0 + $0x288] sm:$0xff]  ;;  %v2466_v18 = vld [vmem:[%s6412_s0 + $0x290] sm:$0xff] }
  0x2a   :  { %2463 = vst [vmem:[%s6413_s2 + $0x280] sm:$0xff] %v2462_v16  ;;  %v2468_v19 = vld [vmem:[%s6412_s0 + $0x298] sm:$0xff]  ;;  %2465 = vst [vmem:[%s6413_s2 + $0x288] sm:$0xff] %v2464_v17  ;;  %v2470_v20 = vld [vmem:[%s6412_s0 + $0x2a0] sm:$0xff] }
  0x2b   :  { %2467 = vst [vmem:[%s6413_s2 + $0x290] sm:$0xff] %v2466_v18  ;;  %2469 = vst [vmem:[%s6413_s2 + $0x298] sm:$0xff] %v2468_v19  ;;  %v2472_v21 = vld [vmem:[%s6412_s0 + $0x2a8] sm:$0xff]  ;;  %v2474_v22 = vld [vmem:[%s6412_s0 + $0x2b0] sm:$0xff] }
  0x2c   :  { %2471 = vst [vmem:[%s6413_s2 + $0x2a0] sm:$0xff] %v2470_v20  ;;  %2473 = vst [vmem:[%s6413_s2 + $0x2a8] sm:$0xff] %v2472_v21  ;;  %v2476_v23 = vld [vmem:[%s6412_s0 + $0x2b8] sm:$0xff]  ;;  %v2478_v24 = vld [vmem:[%s6412_s0 + $0x2c0] sm:$0xff] }
  0x2d   :  { %2475 = vst [vmem:[%s6413_s2 + $0x2b0] sm:$0xff] %v2474_v22  ;;  %v2480_v25 = vld [vmem:[%s6412_s0 + $0x2c8] sm:$0xff]  ;;  %2477 = vst [vmem:[%s6413_s2 + $0x2b8] sm:$0xff] %v2476_v23  ;;  %v2482_v26 = vld [vmem:[%s6412_s0 + $0x2d0] sm:$0xff] }
  0x2e   :  { %2479 = vst [vmem:[%s6413_s2 + $0x2c0] sm:$0xff] %v2478_v24  ;;  %2481 = vst [vmem:[%s6413_s2 + $0x2c8] sm:$0xff] %v2480_v25  ;;  %v2484_v27 = vld [vmem:[%s6412_s0 + $0x2d8] sm:$0xff]  ;;  %v2486_v28 = vld [vmem:[%s6412_s0 + $0x2e0] sm:$0xff] }
  0x2f   :  { %2483 = vst [vmem:[%s6413_s2 + $0x2d0] sm:$0xff] %v2482_v26  ;;  %2485 = vst [vmem:[%s6413_s2 + $0x2d8] sm:$0xff] %v2484_v27  ;;  %v2488_v29 = vld [vmem:[%s6412_s0 + $0x2e8] sm:$0xff]  ;;  %v2490_v30 = vld [vmem:[%s6412_s0 + $0x2f0] sm:$0xff] }
  0x30   :  { %2487 = vst [vmem:[%s6413_s2 + $0x2e0] sm:$0xff] %v2486_v28  ;;  %v2492_v31 = vld [vmem:[%s6412_s0 + $0x2f8] sm:$0xff]  ;;  %2489 = vst [vmem:[%s6413_s2 + $0x2e8] sm:$0xff] %v2488_v29  ;;  %v2494_v32 = vld [vmem:[%s6412_s0 + $0x300] sm:$0xff] }
  0x31   :  { %2491 = vst [vmem:[%s6413_s2 + $0x2f0] sm:$0xff] %v2490_v30  ;;  %2493 = vst [vmem:[%s6413_s2 + $0x2f8] sm:$0xff] %v2492_v31  ;;  %v2496_v33 = vld [vmem:[%s6412_s0 + $0x308] sm:$0xff]  ;;  %v2498_v34 = vld [vmem:[%s6412_s0 + $0x310] sm:$0xff] }
  0x32   :  { %2495 = vst [vmem:[%s6413_s2 + $0x300] sm:$0xff] %v2494_v32  ;;  %2497 = vst [vmem:[%s6413_s2 + $0x308] sm:$0xff] %v2496_v33  ;;  %v2500_v35 = vld [vmem:[%s6412_s0 + $0x318] sm:$0xff]  ;;  %v2502_v36 = vld [vmem:[%s6412_s0 + $0x320] sm:$0xff] }
  0x33   :  { %2499 = vst [vmem:[%s6413_s2 + $0x310] sm:$0xff] %v2498_v34  ;;  %v2504_v37 = vld [vmem:[%s6412_s0 + $0x328] sm:$0xff]  ;;  %2501 = vst [vmem:[%s6413_s2 + $0x318] sm:$0xff] %v2500_v35  ;;  %v2506_v38 = vld [vmem:[%s6412_s0 + $0x330] sm:$0xff] }
  0x34   :  { %2503 = vst [vmem:[%s6413_s2 + $0x320] sm:$0xff] %v2502_v36  ;;  %2505 = vst [vmem:[%s6413_s2 + $0x328] sm:$0xff] %v2504_v37  ;;  %v2508_v39 = vld [vmem:[%s6412_s0 + $0x338] sm:$0xff]  ;;  %v2510_v40 = vld [vmem:[%s6412_s0 + $0x340] sm:$0xff] }
  0x35   :  { %2507 = vst [vmem:[%s6413_s2 + $0x330] sm:$0xff] %v2506_v38  ;;  %2509 = vst [vmem:[%s6413_s2 + $0x338] sm:$0xff] %v2508_v39  ;;  %v2512_v41 = vld [vmem:[%s6412_s0 + $0x348] sm:$0xff]  ;;  %v2514_v42 = vld [vmem:[%s6412_s0 + $0x350] sm:$0xff] }
  0x36   :  { %2511 = vst [vmem:[%s6413_s2 + $0x340] sm:$0xff] %v2510_v40  ;;  %v2516_v43 = vld [vmem:[%s6412_s0 + $0x358] sm:$0xff]  ;;  %2513 = vst [vmem:[%s6413_s2 + $0x348] sm:$0xff] %v2512_v41  ;;  %v2518_v44 = vld [vmem:[%s6412_s0 + $0x360] sm:$0xff] }
  0x37   :  { %2515 = vst [vmem:[%s6413_s2 + $0x350] sm:$0xff] %v2514_v42  ;;  %2517 = vst [vmem:[%s6413_s2 + $0x358] sm:$0xff] %v2516_v43  ;;  %v2520_v45 = vld [vmem:[%s6412_s0 + $0x368] sm:$0xff]  ;;  %v2522_v46 = vld [vmem:[%s6412_s0 + $0x370] sm:$0xff] }
  0x38   :  { %2519 = vst [vmem:[%s6413_s2 + $0x360] sm:$0xff] %v2518_v44  ;;  %2521 = vst [vmem:[%s6413_s2 + $0x368] sm:$0xff] %v2520_v45  ;;  %v2524_v47 = vld [vmem:[%s6412_s0 + $0x378] sm:$0xff]  ;;  %v2526_v48 = vld [vmem:[%s6412_s0 + $0x380] sm:$0xff] }
  0x39   :  { %2523 = vst [vmem:[%s6413_s2 + $0x370] sm:$0xff] %v2522_v46  ;;  %v2528_v49 = vld [vmem:[%s6412_s0 + $0x388] sm:$0xff]  ;;  %2525 = vst [vmem:[%s6413_s2 + $0x378] sm:$0xff] %v2524_v47  ;;  %v2530_v50 = vld [vmem:[%s6412_s0 + $0x390] sm:$0xff] }
  0x3a   :  { %2527 = vst [vmem:[%s6413_s2 + $0x380] sm:$0xff] %v2526_v48  ;;  %2529 = vst [vmem:[%s6413_s2 + $0x388] sm:$0xff] %v2528_v49  ;;  %v2532_v51 = vld [vmem:[%s6412_s0 + $0x398] sm:$0xff]  ;;  %v2534_v52 = vld [vmem:[%s6412_s0 + $0x3a0] sm:$0xff] }
  0x3b   :  { %2531 = vst [vmem:[%s6413_s2 + $0x390] sm:$0xff] %v2530_v50  ;;  %2533 = vst [vmem:[%s6413_s2 + $0x398] sm:$0xff] %v2532_v51  ;;  %v2536_v53 = vld [vmem:[%s6412_s0 + $0x3a8] sm:$0xff]  ;;  %v2538_v54 = vld [vmem:[%s6412_s0 + $0x3b0] sm:$0xff] }
  0x3c   :  { %2535 = vst [vmem:[%s6413_s2 + $0x3a0] sm:$0xff] %v2534_v52  ;;  %v2540_v55 = vld [vmem:[%s6412_s0 + $0x3b8] sm:$0xff]  ;;  %2537 = vst [vmem:[%s6413_s2 + $0x3a8] sm:$0xff] %v2536_v53  ;;  %v2542_v56 = vld [vmem:[%s6412_s0 + $0x3c0] sm:$0xff] }
  0x3d   :  { %2539 = vst [vmem:[%s6413_s2 + $0x3b0] sm:$0xff] %v2538_v54  ;;  %2541 = vst [vmem:[%s6413_s2 + $0x3b8] sm:$0xff] %v2540_v55  ;;  %v2544_v57 = vld [vmem:[%s6412_s0 + $0x3c8] sm:$0xff]  ;;  %v2546_v58 = vld [vmem:[%s6412_s0 + $0x3d0] sm:$0xff] }
  0x3e   :  { %2543 = vst [vmem:[%s6413_s2 + $0x3c0] sm:$0xff] %v2542_v56  ;;  %2545 = vst [vmem:[%s6413_s2 + $0x3c8] sm:$0xff] %v2544_v57  ;;  %v2548_v59 = vld [vmem:[%s6412_s0 + $0x3d8] sm:$0xff]  ;;  %v2550_v60 = vld [vmem:[%s6412_s0 + $0x3e0] sm:$0xff] }
  0x3f   :  { %2547 = vst [vmem:[%s6413_s2 + $0x3d0] sm:$0xff] %v2546_v58  ;;  %v2552_v61 = vld [vmem:[%s6412_s0 + $0x3e8] sm:$0xff]  ;;  %2549 = vst [vmem:[%s6413_s2 + $0x3d8] sm:$0xff] %v2548_v59  ;;  %v2554_v62 = vld [vmem:[%s6412_s0 + $0x3f0] sm:$0xff] }
  0x40   :  { %2551 = vst [vmem:[%s6413_s2 + $0x3e0] sm:$0xff] %v2550_v60  ;;  %2553 = vst [vmem:[%s6413_s2 + $0x3e8] sm:$0xff] %v2552_v61  ;;  %v2556_v63 = vld [vmem:[%s6412_s0 + $0x3f8] sm:$0xff]  ;;  %v2558_v0 = vld [vmem:[%s6412_s0 + $0x400] sm:$0xff] }
  0x41   :  { %2555 = vst [vmem:[%s6413_s2 + $0x3f0] sm:$0xff] %v2554_v62  ;;  %2557 = vst [vmem:[%s6413_s2 + $0x3f8] sm:$0xff] %v2556_v63  ;;  %v2560_v1 = vld [vmem:[%s6412_s0 + $0x408] sm:$0xff]  ;;  %v2562_v2 = vld [vmem:[%s6412_s0 + $0x410] sm:$0xff] }
  0x42   :  { %2559 = vst [vmem:[%s6413_s2 + $0x400] sm:$0xff] %v2558_v0  ;;  %v2564_v3 = vld [vmem:[%s6412_s0 + $0x418] sm:$0xff]  ;;  %2561 = vst [vmem:[%s6413_s2 + $0x408] sm:$0xff] %v2560_v1  ;;  %v2566_v4 = vld [vmem:[%s6412_s0 + $0x420] sm:$0xff] }
  0x43   :  { %2563 = vst [vmem:[%s6413_s2 + $0x410] sm:$0xff] %v2562_v2  ;;  %2565 = vst [vmem:[%s6413_s2 + $0x418] sm:$0xff] %v2564_v3  ;;  %v2568_v5 = vld [vmem:[%s6412_s0 + $0x428] sm:$0xff]  ;;  %v2570_v6 = vld [vmem:[%s6412_s0 + $0x430] sm:$0xff] }
  0x44   :  { %2567 = vst [vmem:[%s6413_s2 + $0x420] sm:$0xff] %v2566_v4  ;;  %2569 = vst [vmem:[%s6413_s2 + $0x428] sm:$0xff] %v2568_v5  ;;  %v2572_v7 = vld [vmem:[%s6412_s0 + $0x438] sm:$0xff]  ;;  %v2574_v8 = vld [vmem:[%s6412_s0 + $0x440] sm:$0xff] }
  0x45   :  { %2571 = vst [vmem:[%s6413_s2 + $0x430] sm:$0xff] %v2570_v6  ;;  %v2576_v9 = vld [vmem:[%s6412_s0 + $0x448] sm:$0xff]  ;;  %2573 = vst [vmem:[%s6413_s2 + $0x438] sm:$0xff] %v2572_v7  ;;  %v2578_v10 = vld [vmem:[%s6412_s0 + $0x450] sm:$0xff] }
  0x46   :  { %2575 = vst [vmem:[%s6413_s2 + $0x440] sm:$0xff] %v2574_v8  ;;  %2577 = vst [vmem:[%s6413_s2 + $0x448] sm:$0xff] %v2576_v9  ;;  %v2580_v11 = vld [vmem:[%s6412_s0 + $0x458] sm:$0xff]  ;;  %v2582_v12 = vld [vmem:[%s6412_s0 + $0x460] sm:$0xff] }
  0x47   :  { %2579 = vst [vmem:[%s6413_s2 + $0x450] sm:$0xff] %v2578_v10  ;;  %2581 = vst [vmem:[%s6413_s2 + $0x458] sm:$0xff] %v2580_v11  ;;  %v2584_v13 = vld [vmem:[%s6412_s0 + $0x468] sm:$0xff]  ;;  %v2586_v14 = vld [vmem:[%s6412_s0 + $0x470] sm:$0xff] }
  0x48   :  { %2583 = vst [vmem:[%s6413_s2 + $0x460] sm:$0xff] %v2582_v12  ;;  %v2588_v15 = vld [vmem:[%s6412_s0 + $0x478] sm:$0xff]  ;;  %2585 = vst [vmem:[%s6413_s2 + $0x468] sm:$0xff] %v2584_v13  ;;  %v2590_v16 = vld [vmem:[%s6412_s0 + $0x480] sm:$0xff] }
  0x49   :  { %2587 = vst [vmem:[%s6413_s2 + $0x470] sm:$0xff] %v2586_v14  ;;  %2589 = vst [vmem:[%s6413_s2 + $0x478] sm:$0xff] %v2588_v15  ;;  %v2592_v17 = vld [vmem:[%s6412_s0 + $0x488] sm:$0xff]  ;;  %v2594_v18 = vld [vmem:[%s6412_s0 + $0x490] sm:$0xff] }
  0x4a   :  { %2591 = vst [vmem:[%s6413_s2 + $0x480] sm:$0xff] %v2590_v16  ;;  %2593 = vst [vmem:[%s6413_s2 + $0x488] sm:$0xff] %v2592_v17  ;;  %v2596_v19 = vld [vmem:[%s6412_s0 + $0x498] sm:$0xff]  ;;  %v2598_v20 = vld [vmem:[%s6412_s0 + $0x4a0] sm:$0xff] }
  0x4b   :  { %2595 = vst [vmem:[%s6413_s2 + $0x490] sm:$0xff] %v2594_v18  ;;  %v2600_v21 = vld [vmem:[%s6412_s0 + $0x4a8] sm:$0xff]  ;;  %2597 = vst [vmem:[%s6413_s2 + $0x498] sm:$0xff] %v2596_v19  ;;  %v2602_v22 = vld [vmem:[%s6412_s0 + $0x4b0] sm:$0xff] }
  0x4c   :  { %2599 = vst [vmem:[%s6413_s2 + $0x4a0] sm:$0xff] %v2598_v20  ;;  %2601 = vst [vmem:[%s6413_s2 + $0x4a8] sm:$0xff] %v2600_v21  ;;  %v2604_v23 = vld [vmem:[%s6412_s0 + $0x4b8] sm:$0xff]  ;;  %v2606_v24 = vld [vmem:[%s6412_s0 + $0x4c0] sm:$0xff] }
  0x4d   :  { %2603 = vst [vmem:[%s6413_s2 + $0x4b0] sm:$0xff] %v2602_v22  ;;  %2605 = vst [vmem:[%s6413_s2 + $0x4b8] sm:$0xff] %v2604_v23  ;;  %v2608_v25 = vld [vmem:[%s6412_s0 + $0x4c8] sm:$0xff]  ;;  %v2610_v26 = vld [vmem:[%s6412_s0 + $0x4d0] sm:$0xff] }
  0x4e   :  { %2607 = vst [vmem:[%s6413_s2 + $0x4c0] sm:$0xff] %v2606_v24  ;;  %v2612_v27 = vld [vmem:[%s6412_s0 + $0x4d8] sm:$0xff]  ;;  %2609 = vst [vmem:[%s6413_s2 + $0x4c8] sm:$0xff] %v2608_v25  ;;  %v2614_v28 = vld [vmem:[%s6412_s0 + $0x4e0] sm:$0xff] }
  0x4f   :  { %2611 = vst [vmem:[%s6413_s2 + $0x4d0] sm:$0xff] %v2610_v26  ;;  %2613 = vst [vmem:[%s6413_s2 + $0x4d8] sm:$0xff] %v2612_v27  ;;  %v2616_v29 = vld [vmem:[%s6412_s0 + $0x4e8] sm:$0xff]  ;;  %v2618_v30 = vld [vmem:[%s6412_s0 + $0x4f0] sm:$0xff] }
  0x50   :  { %2615 = vst [vmem:[%s6413_s2 + $0x4e0] sm:$0xff] %v2614_v28  ;;  %2617 = vst [vmem:[%s6413_s2 + $0x4e8] sm:$0xff] %v2616_v29  ;;  %v2620_v31 = vld [vmem:[%s6412_s0 + $0x4f8] sm:$0xff]  ;;  %v2622_v32 = vld [vmem:[%s6412_s0 + $0x500] sm:$0xff] }
  0x51   :  { %2619 = vst [vmem:[%s6413_s2 + $0x4f0] sm:$0xff] %v2618_v30  ;;  %v2624_v33 = vld [vmem:[%s6412_s0 + $0x508] sm:$0xff]  ;;  %2621 = vst [vmem:[%s6413_s2 + $0x4f8] sm:$0xff] %v2620_v31  ;;  %v2626_v34 = vld [vmem:[%s6412_s0 + $0x510] sm:$0xff] }
  0x52   :  { %2623 = vst [vmem:[%s6413_s2 + $0x500] sm:$0xff] %v2622_v32  ;;  %2625 = vst [vmem:[%s6413_s2 + $0x508] sm:$0xff] %v2624_v33  ;;  %v2628_v35 = vld [vmem:[%s6412_s0 + $0x518] sm:$0xff]  ;;  %v2630_v36 = vld [vmem:[%s6412_s0 + $0x520] sm:$0xff] }
  0x53   :  { %2627 = vst [vmem:[%s6413_s2 + $0x510] sm:$0xff] %v2626_v34  ;;  %2629 = vst [vmem:[%s6413_s2 + $0x518] sm:$0xff] %v2628_v35  ;;  %v2632_v37 = vld [vmem:[%s6412_s0 + $0x528] sm:$0xff]  ;;  %v2634_v38 = vld [vmem:[%s6412_s0 + $0x530] sm:$0xff] }
  0x54   :  { %2631 = vst [vmem:[%s6413_s2 + $0x520] sm:$0xff] %v2630_v36  ;;  %v2636_v39 = vld [vmem:[%s6412_s0 + $0x538] sm:$0xff]  ;;  %2633 = vst [vmem:[%s6413_s2 + $0x528] sm:$0xff] %v2632_v37  ;;  %v2638_v40 = vld [vmem:[%s6412_s0 + $0x540] sm:$0xff] }
  0x55   :  { %2635 = vst [vmem:[%s6413_s2 + $0x530] sm:$0xff] %v2634_v38  ;;  %2637 = vst [vmem:[%s6413_s2 + $0x538] sm:$0xff] %v2636_v39  ;;  %v2640_v41 = vld [vmem:[%s6412_s0 + $0x548] sm:$0xff]  ;;  %v2642_v42 = vld [vmem:[%s6412_s0 + $0x550] sm:$0xff] }
  0x56   :  { %2639 = vst [vmem:[%s6413_s2 + $0x540] sm:$0xff] %v2638_v40  ;;  %2641 = vst [vmem:[%s6413_s2 + $0x548] sm:$0xff] %v2640_v41  ;;  %v2644_v43 = vld [vmem:[%s6412_s0 + $0x558] sm:$0xff]  ;;  %v2646_v44 = vld [vmem:[%s6412_s0 + $0x560] sm:$0xff] }
  0x57   :  { %2643 = vst [vmem:[%s6413_s2 + $0x550] sm:$0xff] %v2642_v42  ;;  %v2648_v45 = vld [vmem:[%s6412_s0 + $0x568] sm:$0xff]  ;;  %2645 = vst [vmem:[%s6413_s2 + $0x558] sm:$0xff] %v2644_v43  ;;  %v2650_v46 = vld [vmem:[%s6412_s0 + $0x570] sm:$0xff] }
  0x58   :  { %2647 = vst [vmem:[%s6413_s2 + $0x560] sm:$0xff] %v2646_v44  ;;  %2649 = vst [vmem:[%s6413_s2 + $0x568] sm:$0xff] %v2648_v45  ;;  %v2652_v47 = vld [vmem:[%s6412_s0 + $0x578] sm:$0xff]  ;;  %v2654_v48 = vld [vmem:[%s6412_s0 + $0x580] sm:$0xff] }
  0x59   :  { %2651 = vst [vmem:[%s6413_s2 + $0x570] sm:$0xff] %v2650_v46  ;;  %2653 = vst [vmem:[%s6413_s2 + $0x578] sm:$0xff] %v2652_v47  ;;  %v2656_v49 = vld [vmem:[%s6412_s0 + $0x588] sm:$0xff]  ;;  %v2658_v50 = vld [vmem:[%s6412_s0 + $0x590] sm:$0xff] }
  0x5a   :  { %2655 = vst [vmem:[%s6413_s2 + $0x580] sm:$0xff] %v2654_v48  ;;  %v2660_v51 = vld [vmem:[%s6412_s0 + $0x598] sm:$0xff]  ;;  %2657 = vst [vmem:[%s6413_s2 + $0x588] sm:$0xff] %v2656_v49  ;;  %v2662_v52 = vld [vmem:[%s6412_s0 + $0x5a0] sm:$0xff] }
  0x5b   :  { %2659 = vst [vmem:[%s6413_s2 + $0x590] sm:$0xff] %v2658_v50  ;;  %2661 = vst [vmem:[%s6413_s2 + $0x598] sm:$0xff] %v2660_v51  ;;  %v2664_v53 = vld [vmem:[%s6412_s0 + $0x5a8] sm:$0xff]  ;;  %v2666_v54 = vld [vmem:[%s6412_s0 + $0x5b0] sm:$0xff] }
  0x5c   :  { %2663 = vst [vmem:[%s6413_s2 + $0x5a0] sm:$0xff] %v2662_v52  ;;  %2665 = vst [vmem:[%s6413_s2 + $0x5a8] sm:$0xff] %v2664_v53  ;;  %v2668_v55 = vld [vmem:[%s6412_s0 + $0x5b8] sm:$0xff]  ;;  %v2670_v56 = vld [vmem:[%s6412_s0 + $0x5c0] sm:$0xff] }
  0x5d   :  { %2667 = vst [vmem:[%s6413_s2 + $0x5b0] sm:$0xff] %v2666_v54  ;;  %v2672_v57 = vld [vmem:[%s6412_s0 + $0x5c8] sm:$0xff]  ;;  %2669 = vst [vmem:[%s6413_s2 + $0x5b8] sm:$0xff] %v2668_v55  ;;  %v2674_v58 = vld [vmem:[%s6412_s0 + $0x5d0] sm:$0xff] }
  0x5e   :  { %2671 = vst [vmem:[%s6413_s2 + $0x5c0] sm:$0xff] %v2670_v56  ;;  %2673 = vst [vmem:[%s6413_s2 + $0x5c8] sm:$0xff] %v2672_v57  ;;  %v2676_v59 = vld [vmem:[%s6412_s0 + $0x5d8] sm:$0xff]  ;;  %v2678_v60 = vld [vmem:[%s6412_s0 + $0x5e0] sm:$0xff] }
  0x5f   :  { %2675 = vst [vmem:[%s6413_s2 + $0x5d0] sm:$0xff] %v2674_v58  ;;  %2677 = vst [vmem:[%s6413_s2 + $0x5d8] sm:$0xff] %v2676_v59  ;;  %v2680_v61 = vld [vmem:[%s6412_s0 + $0x5e8] sm:$0xff]  ;;  %v2682_v62 = vld [vmem:[%s6412_s0 + $0x5f0] sm:$0xff] }
  0x60   :  { %2679 = vst [vmem:[%s6413_s2 + $0x5e0] sm:$0xff] %v2678_v60  ;;  %v2684_v63 = vld [vmem:[%s6412_s0 + $0x5f8] sm:$0xff]  ;;  %2681 = vst [vmem:[%s6413_s2 + $0x5e8] sm:$0xff] %v2680_v61  ;;  %v2686_v0 = vld [vmem:[%s6412_s0 + $0x600] sm:$0xff] }
  0x61   :  { %2683 = vst [vmem:[%s6413_s2 + $0x5f0] sm:$0xff] %v2682_v62  ;;  %2685 = vst [vmem:[%s6413_s2 + $0x5f8] sm:$0xff] %v2684_v63  ;;  %v2688_v1 = vld [vmem:[%s6412_s0 + $0x608] sm:$0xff]  ;;  %v2690_v2 = vld [vmem:[%s6412_s0 + $0x610] sm:$0xff] }
  0x62   :  { %2687 = vst [vmem:[%s6413_s2 + $0x600] sm:$0xff] %v2686_v0  ;;  %2689 = vst [vmem:[%s6413_s2 + $0x608] sm:$0xff] %v2688_v1  ;;  %v2692_v3 = vld [vmem:[%s6412_s0 + $0x618] sm:$0xff]  ;;  %v2694_v4 = vld [vmem:[%s6412_s0 + $0x620] sm:$0xff] }
  0x63   :  { %2691 = vst [vmem:[%s6413_s2 + $0x610] sm:$0xff] %v2690_v2  ;;  %v2696_v5 = vld [vmem:[%s6412_s0 + $0x628] sm:$0xff]  ;;  %2693 = vst [vmem:[%s6413_s2 + $0x618] sm:$0xff] %v2692_v3  ;;  %v2698_v6 = vld [vmem:[%s6412_s0 + $0x630] sm:$0xff] }
  0x64   :  { %2695 = vst [vmem:[%s6413_s2 + $0x620] sm:$0xff] %v2694_v4  ;;  %2697 = vst [vmem:[%s6413_s2 + $0x628] sm:$0xff] %v2696_v5  ;;  %v2700_v7 = vld [vmem:[%s6412_s0 + $0x638] sm:$0xff]  ;;  %v2702_v8 = vld [vmem:[%s6412_s0 + $0x640] sm:$0xff] }
  0x65   :  { %2699 = vst [vmem:[%s6413_s2 + $0x630] sm:$0xff] %v2698_v6  ;;  %2701 = vst [vmem:[%s6413_s2 + $0x638] sm:$0xff] %v2700_v7  ;;  %v2704_v9 = vld [vmem:[%s6412_s0 + $0x648] sm:$0xff]  ;;  %v2706_v10 = vld [vmem:[%s6412_s0 + $0x650] sm:$0xff] }
  0x66   :  { %2703 = vst [vmem:[%s6413_s2 + $0x640] sm:$0xff] %v2702_v8  ;;  %v2708_v11 = vld [vmem:[%s6412_s0 + $0x658] sm:$0xff]  ;;  %2705 = vst [vmem:[%s6413_s2 + $0x648] sm:$0xff] %v2704_v9  ;;  %v2710_v12 = vld [vmem:[%s6412_s0 + $0x660] sm:$0xff] }
  0x67   :  { %2707 = vst [vmem:[%s6413_s2 + $0x650] sm:$0xff] %v2706_v10  ;;  %2709 = vst [vmem:[%s6413_s2 + $0x658] sm:$0xff] %v2708_v11  ;;  %v2712_v13 = vld [vmem:[%s6412_s0 + $0x668] sm:$0xff]  ;;  %v2714_v14 = vld [vmem:[%s6412_s0 + $0x670] sm:$0xff] }
  0x68   :  { %2711 = vst [vmem:[%s6413_s2 + $0x660] sm:$0xff] %v2710_v12  ;;  %2713 = vst [vmem:[%s6413_s2 + $0x668] sm:$0xff] %v2712_v13  ;;  %v2716_v15 = vld [vmem:[%s6412_s0 + $0x678] sm:$0xff]  ;;  %v2718_v16 = vld [vmem:[%s6412_s0 + $0x680] sm:$0xff] }
  0x69   :  { %2715 = vst [vmem:[%s6413_s2 + $0x670] sm:$0xff] %v2714_v14  ;;  %v2720_v17 = vld [vmem:[%s6412_s0 + $0x688] sm:$0xff]  ;;  %2717 = vst [vmem:[%s6413_s2 + $0x678] sm:$0xff] %v2716_v15  ;;  %v2722_v18 = vld [vmem:[%s6412_s0 + $0x690] sm:$0xff] }
  0x6a   :  { %2719 = vst [vmem:[%s6413_s2 + $0x680] sm:$0xff] %v2718_v16  ;;  %2721 = vst [vmem:[%s6413_s2 + $0x688] sm:$0xff] %v2720_v17  ;;  %v2724_v19 = vld [vmem:[%s6412_s0 + $0x698] sm:$0xff]  ;;  %v2726_v20 = vld [vmem:[%s6412_s0 + $0x6a0] sm:$0xff] }
  0x6b   :  { %2723 = vst [vmem:[%s6413_s2 + $0x690] sm:$0xff] %v2722_v18  ;;  %2725 = vst [vmem:[%s6413_s2 + $0x698] sm:$0xff] %v2724_v19  ;;  %v2728_v21 = vld [vmem:[%s6412_s0 + $0x6a8] sm:$0xff]  ;;  %v2730_v22 = vld [vmem:[%s6412_s0 + $0x6b0] sm:$0xff] }
  0x6c   :  { %2727 = vst [vmem:[%s6413_s2 + $0x6a0] sm:$0xff] %v2726_v20  ;;  %v2732_v23 = vld [vmem:[%s6412_s0 + $0x6b8] sm:$0xff]  ;;  %2729 = vst [vmem:[%s6413_s2 + $0x6a8] sm:$0xff] %v2728_v21  ;;  %v2734_v24 = vld [vmem:[%s6412_s0 + $0x6c0] sm:$0xff] }
  0x6d   :  { %2731 = vst [vmem:[%s6413_s2 + $0x6b0] sm:$0xff] %v2730_v22  ;;  %2733 = vst [vmem:[%s6413_s2 + $0x6b8] sm:$0xff] %v2732_v23  ;;  %v2736_v25 = vld [vmem:[%s6412_s0 + $0x6c8] sm:$0xff]  ;;  %v2738_v26 = vld [vmem:[%s6412_s0 + $0x6d0] sm:$0xff] }
  0x6e   :  { %2735 = vst [vmem:[%s6413_s2 + $0x6c0] sm:$0xff] %v2734_v24  ;;  %2737 = vst [vmem:[%s6413_s2 + $0x6c8] sm:$0xff] %v2736_v25  ;;  %v2740_v27 = vld [vmem:[%s6412_s0 + $0x6d8] sm:$0xff]  ;;  %v2742_v28 = vld [vmem:[%s6412_s0 + $0x6e0] sm:$0xff] }
  0x6f   :  { %2739 = vst [vmem:[%s6413_s2 + $0x6d0] sm:$0xff] %v2738_v26  ;;  %v2744_v29 = vld [vmem:[%s6412_s0 + $0x6e8] sm:$0xff]  ;;  %2741 = vst [vmem:[%s6413_s2 + $0x6d8] sm:$0xff] %v2740_v27  ;;  %v2746_v30 = vld [vmem:[%s6412_s0 + $0x6f0] sm:$0xff] }
  0x70   :  { %2743 = vst [vmem:[%s6413_s2 + $0x6e0] sm:$0xff] %v2742_v28  ;;  %2745 = vst [vmem:[%s6413_s2 + $0x6e8] sm:$0xff] %v2744_v29  ;;  %v2748_v31 = vld [vmem:[%s6412_s0 + $0x6f8] sm:$0xff]  ;;  %v2750_v32 = vld [vmem:[%s6412_s0 + $0x700] sm:$0xff] }
  0x71   :  { %2747 = vst [vmem:[%s6413_s2 + $0x6f0] sm:$0xff] %v2746_v30  ;;  %2749 = vst [vmem:[%s6413_s2 + $0x6f8] sm:$0xff] %v2748_v31  ;;  %v2752_v33 = vld [vmem:[%s6412_s0 + $0x708] sm:$0xff]  ;;  %v2754_v34 = vld [vmem:[%s6412_s0 + $0x710] sm:$0xff] }
  0x72   :  { %2751 = vst [vmem:[%s6413_s2 + $0x700] sm:$0xff] %v2750_v32  ;;  %v2756_v35 = vld [vmem:[%s6412_s0 + $0x718] sm:$0xff]  ;;  %2753 = vst [vmem:[%s6413_s2 + $0x708] sm:$0xff] %v2752_v33  ;;  %v2758_v36 = vld [vmem:[%s6412_s0 + $0x720] sm:$0xff] }
  0x73   :  { %2755 = vst [vmem:[%s6413_s2 + $0x710] sm:$0xff] %v2754_v34  ;;  %2757 = vst [vmem:[%s6413_s2 + $0x718] sm:$0xff] %v2756_v35  ;;  %v2760_v37 = vld [vmem:[%s6412_s0 + $0x728] sm:$0xff]  ;;  %v2762_v38 = vld [vmem:[%s6412_s0 + $0x730] sm:$0xff] }
  0x74   :  { %2759 = vst [vmem:[%s6413_s2 + $0x720] sm:$0xff] %v2758_v36  ;;  %2761 = vst [vmem:[%s6413_s2 + $0x728] sm:$0xff] %v2760_v37  ;;  %v2764_v39 = vld [vmem:[%s6412_s0 + $0x738] sm:$0xff]  ;;  %v2766_v40 = vld [vmem:[%s6412_s0 + $0x740] sm:$0xff] }
  0x75   :  { %2763 = vst [vmem:[%s6413_s2 + $0x730] sm:$0xff] %v2762_v38  ;;  %v2768_v41 = vld [vmem:[%s6412_s0 + $0x748] sm:$0xff]  ;;  %2765 = vst [vmem:[%s6413_s2 + $0x738] sm:$0xff] %v2764_v39  ;;  %v2770_v42 = vld [vmem:[%s6412_s0 + $0x750] sm:$0xff] }
  0x76   :  { %2767 = vst [vmem:[%s6413_s2 + $0x740] sm:$0xff] %v2766_v40  ;;  %2769 = vst [vmem:[%s6413_s2 + $0x748] sm:$0xff] %v2768_v41  ;;  %v2772_v43 = vld [vmem:[%s6412_s0 + $0x758] sm:$0xff]  ;;  %v2774_v44 = vld [vmem:[%s6412_s0 + $0x760] sm:$0xff] }
  0x77   :  { %2771 = vst [vmem:[%s6413_s2 + $0x750] sm:$0xff] %v2770_v42  ;;  %2773 = vst [vmem:[%s6413_s2 + $0x758] sm:$0xff] %v2772_v43  ;;  %v2776_v45 = vld [vmem:[%s6412_s0 + $0x768] sm:$0xff]  ;;  %v2778_v46 = vld [vmem:[%s6412_s0 + $0x770] sm:$0xff] }
  0x78   :  { %2775 = vst [vmem:[%s6413_s2 + $0x760] sm:$0xff] %v2774_v44  ;;  %v2780_v47 = vld [vmem:[%s6412_s0 + $0x778] sm:$0xff]  ;;  %2777 = vst [vmem:[%s6413_s2 + $0x768] sm:$0xff] %v2776_v45  ;;  %v2782_v48 = vld [vmem:[%s6412_s0 + $0x780] sm:$0xff] }
  0x79   :  { %2779 = vst [vmem:[%s6413_s2 + $0x770] sm:$0xff] %v2778_v46  ;;  %2781 = vst [vmem:[%s6413_s2 + $0x778] sm:$0xff] %v2780_v47  ;;  %v2784_v49 = vld [vmem:[%s6412_s0 + $0x788] sm:$0xff]  ;;  %v2786_v50 = vld [vmem:[%s6412_s0 + $0x790] sm:$0xff] }
  0x7a   :  { %2783 = vst [vmem:[%s6413_s2 + $0x780] sm:$0xff] %v2782_v48  ;;  %2785 = vst [vmem:[%s6413_s2 + $0x788] sm:$0xff] %v2784_v49  ;;  %v2788_v51 = vld [vmem:[%s6412_s0 + $0x798] sm:$0xff]  ;;  %v2790_v52 = vld [vmem:[%s6412_s0 + $0x7a0] sm:$0xff] }
  0x7b   :  { %2787 = vst [vmem:[%s6413_s2 + $0x790] sm:$0xff] %v2786_v50  ;;  %v2792_v53 = vld [vmem:[%s6412_s0 + $0x7a8] sm:$0xff]  ;;  %2789 = vst [vmem:[%s6413_s2 + $0x798] sm:$0xff] %v2788_v51  ;;  %v2794_v54 = vld [vmem:[%s6412_s0 + $0x7b0] sm:$0xff] }
  0x7c   :  { %2791 = vst [vmem:[%s6413_s2 + $0x7a0] sm:$0xff] %v2790_v52  ;;  %2793 = vst [vmem:[%s6413_s2 + $0x7a8] sm:$0xff] %v2792_v53  ;;  %v2796_v55 = vld [vmem:[%s6412_s0 + $0x7b8] sm:$0xff]  ;;  %v2798_v56 = vld [vmem:[%s6412_s0 + $0x7c0] sm:$0xff] }
  0x7d   :  { %2795 = vst [vmem:[%s6413_s2 + $0x7b0] sm:$0xff] %v2794_v54  ;;  %2797 = vst [vmem:[%s6413_s2 + $0x7b8] sm:$0xff] %v2796_v55  ;;  %v2800_v57 = vld [vmem:[%s6412_s0 + $0x7c8] sm:$0xff]  ;;  %v2802_v58 = vld [vmem:[%s6412_s0 + $0x7d0] sm:$0xff] }
  0x7e   :  { %2799 = vst [vmem:[%s6413_s2 + $0x7c0] sm:$0xff] %v2798_v56  ;;  %v2804_v59 = vld [vmem:[%s6412_s0 + $0x7d8] sm:$0xff]  ;;  %2801 = vst [vmem:[%s6413_s2 + $0x7c8] sm:$0xff] %v2800_v57  ;;  %v2806_v60 = vld [vmem:[%s6412_s0 + $0x7e0] sm:$0xff] }
  0x7f   :  { %2803 = vst [vmem:[%s6413_s2 + $0x7d0] sm:$0xff] %v2802_v58  ;;  %2805 = vst [vmem:[%s6413_s2 + $0x7d8] sm:$0xff] %v2804_v59  ;;  %v2808_v61 = vld [vmem:[%s6412_s0 + $0x7e8] sm:$0xff]  ;;  %v2810_v62 = vld [vmem:[%s6412_s0 + $0x7f0] sm:$0xff] }
  0x80   :  { %2807 = vst [vmem:[%s6413_s2 + $0x7e0] sm:$0xff] %v2806_v60  ;;  %2809 = vst [vmem:[%s6413_s2 + $0x7e8] sm:$0xff] %v2808_v61  ;;  %v2812_v63 = vld [vmem:[%s6412_s0 + $0x7f8] sm:$0xff]  ;;  %v1027_v0 = vld [vmem:[%s6414_s1] sm:$0xff] }
  0x81   :  { %2811 = vst [vmem:[%s6413_s2 + $0x7f0] sm:$0xff] %v2810_v62  ;;  %v2815_v1 = vld [vmem:[%s6414_s1 + $0x8] sm:$0xff]  ;;  %2813 = vst [vmem:[%s6413_s2 + $0x7f8] sm:$0xff] %v2812_v63  ;;  %v2817_v2 = vld [vmem:[%s6414_s1 + $0x10] sm:$0xff] }
  0x82   :  { %2814 = vst [vmem:[%s6413_s2 + $0x800] sm:$0xff] %v1027_v0  ;;  %2816 = vst [vmem:[%s6413_s2 + $0x808] sm:$0xff] %v2815_v1  ;;  %v2819_v3 = vld [vmem:[%s6414_s1 + $0x18] sm:$0xff]  ;;  %v2821_v4 = vld [vmem:[%s6414_s1 + $0x20] sm:$0xff] }
  0x83   :  { %2818 = vst [vmem:[%s6413_s2 + $0x810] sm:$0xff] %v2817_v2  ;;  %2820 = vst [vmem:[%s6413_s2 + $0x818] sm:$0xff] %v2819_v3  ;;  %v2823_v5 = vld [vmem:[%s6414_s1 + $0x28] sm:$0xff]  ;;  %v2825_v6 = vld [vmem:[%s6414_s1 + $0x30] sm:$0xff] }
  0x84   :  { %2822 = vst [vmem:[%s6413_s2 + $0x820] sm:$0xff] %v2821_v4  ;;  %v2827_v7 = vld [vmem:[%s6414_s1 + $0x38] sm:$0xff]  ;;  %2824 = vst [vmem:[%s6413_s2 + $0x828] sm:$0xff] %v2823_v5  ;;  %v2829_v8 = vld [vmem:[%s6414_s1 + $0x40] sm:$0xff] }
  0x85   :  { %2826 = vst [vmem:[%s6413_s2 + $0x830] sm:$0xff] %v2825_v6  ;;  %2828 = vst [vmem:[%s6413_s2 + $0x838] sm:$0xff] %v2827_v7  ;;  %v2831_v9 = vld [vmem:[%s6414_s1 + $0x48] sm:$0xff]  ;;  %v2833_v10 = vld [vmem:[%s6414_s1 + $0x50] sm:$0xff] }
  0x86   :  { %2830 = vst [vmem:[%s6413_s2 + $0x840] sm:$0xff] %v2829_v8  ;;  %2832 = vst [vmem:[%s6413_s2 + $0x848] sm:$0xff] %v2831_v9  ;;  %v2835_v11 = vld [vmem:[%s6414_s1 + $0x58] sm:$0xff]  ;;  %v2837_v12 = vld [vmem:[%s6414_s1 + $0x60] sm:$0xff] }
  0x87   :  { %2834 = vst [vmem:[%s6413_s2 + $0x850] sm:$0xff] %v2833_v10  ;;  %v2839_v13 = vld [vmem:[%s6414_s1 + $0x68] sm:$0xff]  ;;  %2836 = vst [vmem:[%s6413_s2 + $0x858] sm:$0xff] %v2835_v11  ;;  %v2841_v14 = vld [vmem:[%s6414_s1 + $0x70] sm:$0xff] }
  0x88   :  { %2838 = vst [vmem:[%s6413_s2 + $0x860] sm:$0xff] %v2837_v12  ;;  %2840 = vst [vmem:[%s6413_s2 + $0x868] sm:$0xff] %v2839_v13  ;;  %v2843_v15 = vld [vmem:[%s6414_s1 + $0x78] sm:$0xff]  ;;  %v2845_v16 = vld [vmem:[%s6414_s1 + $0x80] sm:$0xff] }
  0x89   :  { %2842 = vst [vmem:[%s6413_s2 + $0x870] sm:$0xff] %v2841_v14  ;;  %2844 = vst [vmem:[%s6413_s2 + $0x878] sm:$0xff] %v2843_v15  ;;  %v2847_v17 = vld [vmem:[%s6414_s1 + $0x88] sm:$0xff]  ;;  %v2849_v18 = vld [vmem:[%s6414_s1 + $0x90] sm:$0xff] }
  0x8a   :  { %2846 = vst [vmem:[%s6413_s2 + $0x880] sm:$0xff] %v2845_v16  ;;  %v2851_v19 = vld [vmem:[%s6414_s1 + $0x98] sm:$0xff]  ;;  %2848 = vst [vmem:[%s6413_s2 + $0x888] sm:$0xff] %v2847_v17  ;;  %v2853_v20 = vld [vmem:[%s6414_s1 + $0xa0] sm:$0xff] }
  0x8b   :  { %2850 = vst [vmem:[%s6413_s2 + $0x890] sm:$0xff] %v2849_v18  ;;  %2852 = vst [vmem:[%s6413_s2 + $0x898] sm:$0xff] %v2851_v19  ;;  %v2855_v21 = vld [vmem:[%s6414_s1 + $0xa8] sm:$0xff]  ;;  %v2857_v22 = vld [vmem:[%s6414_s1 + $0xb0] sm:$0xff] }
  0x8c   :  { %2854 = vst [vmem:[%s6413_s2 + $0x8a0] sm:$0xff] %v2853_v20  ;;  %2856 = vst [vmem:[%s6413_s2 + $0x8a8] sm:$0xff] %v2855_v21  ;;  %v2859_v23 = vld [vmem:[%s6414_s1 + $0xb8] sm:$0xff]  ;;  %v2861_v24 = vld [vmem:[%s6414_s1 + $0xc0] sm:$0xff] }
  0x8d   :  { %2858 = vst [vmem:[%s6413_s2 + $0x8b0] sm:$0xff] %v2857_v22  ;;  %v2863_v25 = vld [vmem:[%s6414_s1 + $0xc8] sm:$0xff]  ;;  %2860 = vst [vmem:[%s6413_s2 + $0x8b8] sm:$0xff] %v2859_v23  ;;  %v2865_v26 = vld [vmem:[%s6414_s1 + $0xd0] sm:$0xff] }
  0x8e   :  { %2862 = vst [vmem:[%s6413_s2 + $0x8c0] sm:$0xff] %v2861_v24  ;;  %2864 = vst [vmem:[%s6413_s2 + $0x8c8] sm:$0xff] %v2863_v25  ;;  %v2867_v27 = vld [vmem:[%s6414_s1 + $0xd8] sm:$0xff]  ;;  %v2869_v28 = vld [vmem:[%s6414_s1 + $0xe0] sm:$0xff] }
  0x8f   :  { %2866 = vst [vmem:[%s6413_s2 + $0x8d0] sm:$0xff] %v2865_v26  ;;  %2868 = vst [vmem:[%s6413_s2 + $0x8d8] sm:$0xff] %v2867_v27  ;;  %v2871_v29 = vld [vmem:[%s6414_s1 + $0xe8] sm:$0xff]  ;;  %v2873_v30 = vld [vmem:[%s6414_s1 + $0xf0] sm:$0xff] }
  0x90   :  { %2870 = vst [vmem:[%s6413_s2 + $0x8e0] sm:$0xff] %v2869_v28  ;;  %v2875_v31 = vld [vmem:[%s6414_s1 + $0xf8] sm:$0xff]  ;;  %2872 = vst [vmem:[%s6413_s2 + $0x8e8] sm:$0xff] %v2871_v29  ;;  %v2877_v32 = vld [vmem:[%s6414_s1 + $0x100] sm:$0xff] }
  0x91   :  { %2874 = vst [vmem:[%s6413_s2 + $0x8f0] sm:$0xff] %v2873_v30  ;;  %2876 = vst [vmem:[%s6413_s2 + $0x8f8] sm:$0xff] %v2875_v31  ;;  %v2879_v33 = vld [vmem:[%s6414_s1 + $0x108] sm:$0xff]  ;;  %v2881_v34 = vld [vmem:[%s6414_s1 + $0x110] sm:$0xff] }
  0x92   :  { %2878 = vst [vmem:[%s6413_s2 + $0x900] sm:$0xff] %v2877_v32  ;;  %2880 = vst [vmem:[%s6413_s2 + $0x908] sm:$0xff] %v2879_v33  ;;  %v2883_v35 = vld [vmem:[%s6414_s1 + $0x118] sm:$0xff]  ;;  %v2885_v36 = vld [vmem:[%s6414_s1 + $0x120] sm:$0xff] }
  0x93   :  { %2882 = vst [vmem:[%s6413_s2 + $0x910] sm:$0xff] %v2881_v34  ;;  %v2887_v37 = vld [vmem:[%s6414_s1 + $0x128] sm:$0xff]  ;;  %2884 = vst [vmem:[%s6413_s2 + $0x918] sm:$0xff] %v2883_v35  ;;  %v2889_v38 = vld [vmem:[%s6414_s1 + $0x130] sm:$0xff] }
  0x94   :  { %2886 = vst [vmem:[%s6413_s2 + $0x920] sm:$0xff] %v2885_v36  ;;  %2888 = vst [vmem:[%s6413_s2 + $0x928] sm:$0xff] %v2887_v37  ;;  %v2891_v39 = vld [vmem:[%s6414_s1 + $0x138] sm:$0xff]  ;;  %v2893_v40 = vld [vmem:[%s6414_s1 + $0x140] sm:$0xff] }
  0x95   :  { %2890 = vst [vmem:[%s6413_s2 + $0x930] sm:$0xff] %v2889_v38  ;;  %2892 = vst [vmem:[%s6413_s2 + $0x938] sm:$0xff] %v2891_v39  ;;  %v2895_v41 = vld [vmem:[%s6414_s1 + $0x148] sm:$0xff]  ;;  %v2897_v42 = vld [vmem:[%s6414_s1 + $0x150] sm:$0xff] }
  0x96   :  { %2894 = vst [vmem:[%s6413_s2 + $0x940] sm:$0xff] %v2893_v40  ;;  %v2899_v43 = vld [vmem:[%s6414_s1 + $0x158] sm:$0xff]  ;;  %2896 = vst [vmem:[%s6413_s2 + $0x948] sm:$0xff] %v2895_v41  ;;  %v2901_v44 = vld [vmem:[%s6414_s1 + $0x160] sm:$0xff] }
  0x97   :  { %2898 = vst [vmem:[%s6413_s2 + $0x950] sm:$0xff] %v2897_v42  ;;  %2900 = vst [vmem:[%s6413_s2 + $0x958] sm:$0xff] %v2899_v43  ;;  %v2903_v45 = vld [vmem:[%s6414_s1 + $0x168] sm:$0xff]  ;;  %v2905_v46 = vld [vmem:[%s6414_s1 + $0x170] sm:$0xff] }
  0x98   :  { %2902 = vst [vmem:[%s6413_s2 + $0x960] sm:$0xff] %v2901_v44  ;;  %2904 = vst [vmem:[%s6413_s2 + $0x968] sm:$0xff] %v2903_v45  ;;  %v2907_v47 = vld [vmem:[%s6414_s1 + $0x178] sm:$0xff]  ;;  %v2909_v48 = vld [vmem:[%s6414_s1 + $0x180] sm:$0xff] }
  0x99   :  { %2906 = vst [vmem:[%s6413_s2 + $0x970] sm:$0xff] %v2905_v46  ;;  %v2911_v49 = vld [vmem:[%s6414_s1 + $0x188] sm:$0xff]  ;;  %2908 = vst [vmem:[%s6413_s2 + $0x978] sm:$0xff] %v2907_v47  ;;  %v2913_v50 = vld [vmem:[%s6414_s1 + $0x190] sm:$0xff] }
  0x9a   :  { %2910 = vst [vmem:[%s6413_s2 + $0x980] sm:$0xff] %v2909_v48  ;;  %2912 = vst [vmem:[%s6413_s2 + $0x988] sm:$0xff] %v2911_v49  ;;  %v2915_v51 = vld [vmem:[%s6414_s1 + $0x198] sm:$0xff]  ;;  %v2917_v52 = vld [vmem:[%s6414_s1 + $0x1a0] sm:$0xff] }
  0x9b   :  { %2914 = vst [vmem:[%s6413_s2 + $0x990] sm:$0xff] %v2913_v50  ;;  %2916 = vst [vmem:[%s6413_s2 + $0x998] sm:$0xff] %v2915_v51  ;;  %v2919_v53 = vld [vmem:[%s6414_s1 + $0x1a8] sm:$0xff]  ;;  %v2921_v54 = vld [vmem:[%s6414_s1 + $0x1b0] sm:$0xff] }
  0x9c   :  { %2918 = vst [vmem:[%s6413_s2 + $0x9a0] sm:$0xff] %v2917_v52  ;;  %v2923_v55 = vld [vmem:[%s6414_s1 + $0x1b8] sm:$0xff]  ;;  %2920 = vst [vmem:[%s6413_s2 + $0x9a8] sm:$0xff] %v2919_v53  ;;  %v2925_v56 = vld [vmem:[%s6414_s1 + $0x1c0] sm:$0xff] }
  0x9d   :  { %2922 = vst [vmem:[%s6413_s2 + $0x9b0] sm:$0xff] %v2921_v54  ;;  %2924 = vst [vmem:[%s6413_s2 + $0x9b8] sm:$0xff] %v2923_v55  ;;  %v2927_v57 = vld [vmem:[%s6414_s1 + $0x1c8] sm:$0xff]  ;;  %v2929_v58 = vld [vmem:[%s6414_s1 + $0x1d0] sm:$0xff] }
  0x9e   :  { %2926 = vst [vmem:[%s6413_s2 + $0x9c0] sm:$0xff] %v2925_v56  ;;  %2928 = vst [vmem:[%s6413_s2 + $0x9c8] sm:$0xff] %v2927_v57  ;;  %v2931_v59 = vld [vmem:[%s6414_s1 + $0x1d8] sm:$0xff]  ;;  %v2933_v60 = vld [vmem:[%s6414_s1 + $0x1e0] sm:$0xff] }
  0x9f   :  { %2930 = vst [vmem:[%s6413_s2 + $0x9d0] sm:$0xff] %v2929_v58  ;;  %v2935_v61 = vld [vmem:[%s6414_s1 + $0x1e8] sm:$0xff]  ;;  %2932 = vst [vmem:[%s6413_s2 + $0x9d8] sm:$0xff] %v2931_v59  ;;  %v2937_v62 = vld [vmem:[%s6414_s1 + $0x1f0] sm:$0xff] }
  0xa0   :  { %2934 = vst [vmem:[%s6413_s2 + $0x9e0] sm:$0xff] %v2933_v60  ;;  %2936 = vst [vmem:[%s6413_s2 + $0x9e8] sm:$0xff] %v2935_v61  ;;  %v2939_v63 = vld [vmem:[%s6414_s1 + $0x1f8] sm:$0xff]  ;;  %v2941_v0 = vld [vmem:[%s6414_s1 + $0x200] sm:$0xff] }
  0xa1   :  { %2938 = vst [vmem:[%s6413_s2 + $0x9f0] sm:$0xff] %v2937_v62  ;;  %2940 = vst [vmem:[%s6413_s2 + $0x9f8] sm:$0xff] %v2939_v63  ;;  %v2943_v1 = vld [vmem:[%s6414_s1 + $0x208] sm:$0xff]  ;;  %v2945_v2 = vld [vmem:[%s6414_s1 + $0x210] sm:$0xff] }
  0xa2   :  { %2942 = vst [vmem:[%s6413_s2 + $0xa00] sm:$0xff] %v2941_v0  ;;  %v2947_v3 = vld [vmem:[%s6414_s1 + $0x218] sm:$0xff]  ;;  %2944 = vst [vmem:[%s6413_s2 + $0xa08] sm:$0xff] %v2943_v1  ;;  %v2949_v4 = vld [vmem:[%s6414_s1 + $0x220] sm:$0xff] }
  0xa3   :  { %2946 = vst [vmem:[%s6413_s2 + $0xa10] sm:$0xff] %v2945_v2  ;;  %2948 = vst [vmem:[%s6413_s2 + $0xa18] sm:$0xff] %v2947_v3  ;;  %v2951_v5 = vld [vmem:[%s6414_s1 + $0x228] sm:$0xff]  ;;  %v2953_v6 = vld [vmem:[%s6414_s1 + $0x230] sm:$0xff] }
  0xa4   :  { %2950 = vst [vmem:[%s6413_s2 + $0xa20] sm:$0xff] %v2949_v4  ;;  %2952 = vst [vmem:[%s6413_s2 + $0xa28] sm:$0xff] %v2951_v5  ;;  %v2955_v7 = vld [vmem:[%s6414_s1 + $0x238] sm:$0xff]  ;;  %v2957_v8 = vld [vmem:[%s6414_s1 + $0x240] sm:$0xff] }
  0xa5   :  { %2954 = vst [vmem:[%s6413_s2 + $0xa30] sm:$0xff] %v2953_v6  ;;  %v2959_v9 = vld [vmem:[%s6414_s1 + $0x248] sm:$0xff]  ;;  %2956 = vst [vmem:[%s6413_s2 + $0xa38] sm:$0xff] %v2955_v7  ;;  %v2961_v10 = vld [vmem:[%s6414_s1 + $0x250] sm:$0xff] }
  0xa6   :  { %2958 = vst [vmem:[%s6413_s2 + $0xa40] sm:$0xff] %v2957_v8  ;;  %2960 = vst [vmem:[%s6413_s2 + $0xa48] sm:$0xff] %v2959_v9  ;;  %v2963_v11 = vld [vmem:[%s6414_s1 + $0x258] sm:$0xff]  ;;  %v2965_v12 = vld [vmem:[%s6414_s1 + $0x260] sm:$0xff] }
  0xa7   :  { %2962 = vst [vmem:[%s6413_s2 + $0xa50] sm:$0xff] %v2961_v10  ;;  %2964 = vst [vmem:[%s6413_s2 + $0xa58] sm:$0xff] %v2963_v11  ;;  %v2967_v13 = vld [vmem:[%s6414_s1 + $0x268] sm:$0xff]  ;;  %v2969_v14 = vld [vmem:[%s6414_s1 + $0x270] sm:$0xff] }
  0xa8   :  { %2966 = vst [vmem:[%s6413_s2 + $0xa60] sm:$0xff] %v2965_v12  ;;  %v2971_v15 = vld [vmem:[%s6414_s1 + $0x278] sm:$0xff]  ;;  %2968 = vst [vmem:[%s6413_s2 + $0xa68] sm:$0xff] %v2967_v13  ;;  %v2973_v16 = vld [vmem:[%s6414_s1 + $0x280] sm:$0xff] }
  0xa9   :  { %2970 = vst [vmem:[%s6413_s2 + $0xa70] sm:$0xff] %v2969_v14  ;;  %2972 = vst [vmem:[%s6413_s2 + $0xa78] sm:$0xff] %v2971_v15  ;;  %v2975_v17 = vld [vmem:[%s6414_s1 + $0x288] sm:$0xff]  ;;  %v2977_v18 = vld [vmem:[%s6414_s1 + $0x290] sm:$0xff] }
  0xaa   :  { %2974 = vst [vmem:[%s6413_s2 + $0xa80] sm:$0xff] %v2973_v16  ;;  %2976 = vst [vmem:[%s6413_s2 + $0xa88] sm:$0xff] %v2975_v17  ;;  %v2979_v19 = vld [vmem:[%s6414_s1 + $0x298] sm:$0xff]  ;;  %v2981_v20 = vld [vmem:[%s6414_s1 + $0x2a0] sm:$0xff] }
  0xab   :  { %2978 = vst [vmem:[%s6413_s2 + $0xa90] sm:$0xff] %v2977_v18  ;;  %v2983_v21 = vld [vmem:[%s6414_s1 + $0x2a8] sm:$0xff]  ;;  %2980 = vst [vmem:[%s6413_s2 + $0xa98] sm:$0xff] %v2979_v19  ;;  %v2985_v22 = vld [vmem:[%s6414_s1 + $0x2b0] sm:$0xff] }
  0xac   :  { %2982 = vst [vmem:[%s6413_s2 + $0xaa0] sm:$0xff] %v2981_v20  ;;  %2984 = vst [vmem:[%s6413_s2 + $0xaa8] sm:$0xff] %v2983_v21  ;;  %v2987_v23 = vld [vmem:[%s6414_s1 + $0x2b8] sm:$0xff]  ;;  %v2989_v24 = vld [vmem:[%s6414_s1 + $0x2c0] sm:$0xff] }
  0xad   :  { %2986 = vst [vmem:[%s6413_s2 + $0xab0] sm:$0xff] %v2985_v22  ;;  %2988 = vst [vmem:[%s6413_s2 + $0xab8] sm:$0xff] %v2987_v23  ;;  %v2991_v25 = vld [vmem:[%s6414_s1 + $0x2c8] sm:$0xff]  ;;  %v2993_v26 = vld [vmem:[%s6414_s1 + $0x2d0] sm:$0xff] }
  0xae   :  { %2990 = vst [vmem:[%s6413_s2 + $0xac0] sm:$0xff] %v2989_v24  ;;  %v2995_v27 = vld [vmem:[%s6414_s1 + $0x2d8] sm:$0xff]  ;;  %2992 = vst [vmem:[%s6413_s2 + $0xac8] sm:$0xff] %v2991_v25  ;;  %v2997_v28 = vld [vmem:[%s6414_s1 + $0x2e0] sm:$0xff] }
  0xaf   :  { %2994 = vst [vmem:[%s6413_s2 + $0xad0] sm:$0xff] %v2993_v26  ;;  %2996 = vst [vmem:[%s6413_s2 + $0xad8] sm:$0xff] %v2995_v27  ;;  %v2999_v29 = vld [vmem:[%s6414_s1 + $0x2e8] sm:$0xff]  ;;  %v3001_v30 = vld [vmem:[%s6414_s1 + $0x2f0] sm:$0xff] }
  0xb0   :  { %2998 = vst [vmem:[%s6413_s2 + $0xae0] sm:$0xff] %v2997_v28  ;;  %3000 = vst [vmem:[%s6413_s2 + $0xae8] sm:$0xff] %v2999_v29  ;;  %v3003_v31 = vld [vmem:[%s6414_s1 + $0x2f8] sm:$0xff]  ;;  %v3005_v32 = vld [vmem:[%s6414_s1 + $0x300] sm:$0xff] }
  0xb1   :  { %3002 = vst [vmem:[%s6413_s2 + $0xaf0] sm:$0xff] %v3001_v30  ;;  %v3007_v33 = vld [vmem:[%s6414_s1 + $0x308] sm:$0xff]  ;;  %3004 = vst [vmem:[%s6413_s2 + $0xaf8] sm:$0xff] %v3003_v31  ;;  %v3009_v34 = vld [vmem:[%s6414_s1 + $0x310] sm:$0xff] }
  0xb2   :  { %3006 = vst [vmem:[%s6413_s2 + $0xb00] sm:$0xff] %v3005_v32  ;;  %3008 = vst [vmem:[%s6413_s2 + $0xb08] sm:$0xff] %v3007_v33  ;;  %v3011_v35 = vld [vmem:[%s6414_s1 + $0x318] sm:$0xff]  ;;  %v3013_v36 = vld [vmem:[%s6414_s1 + $0x320] sm:$0xff] }
  0xb3   :  { %3010 = vst [vmem:[%s6413_s2 + $0xb10] sm:$0xff] %v3009_v34  ;;  %3012 = vst [vmem:[%s6413_s2 + $0xb18] sm:$0xff] %v3011_v35  ;;  %v3015_v37 = vld [vmem:[%s6414_s1 + $0x328] sm:$0xff]  ;;  %v3017_v38 = vld [vmem:[%s6414_s1 + $0x330] sm:$0xff] }
  0xb4   :  { %3014 = vst [vmem:[%s6413_s2 + $0xb20] sm:$0xff] %v3013_v36  ;;  %v3019_v39 = vld [vmem:[%s6414_s1 + $0x338] sm:$0xff]  ;;  %3016 = vst [vmem:[%s6413_s2 + $0xb28] sm:$0xff] %v3015_v37  ;;  %v3021_v40 = vld [vmem:[%s6414_s1 + $0x340] sm:$0xff] }
  0xb5   :  { %3018 = vst [vmem:[%s6413_s2 + $0xb30] sm:$0xff] %v3017_v38  ;;  %3020 = vst [vmem:[%s6413_s2 + $0xb38] sm:$0xff] %v3019_v39  ;;  %v3023_v41 = vld [vmem:[%s6414_s1 + $0x348] sm:$0xff]  ;;  %v3025_v42 = vld [vmem:[%s6414_s1 + $0x350] sm:$0xff] }
  0xb6   :  { %3022 = vst [vmem:[%s6413_s2 + $0xb40] sm:$0xff] %v3021_v40  ;;  %3024 = vst [vmem:[%s6413_s2 + $0xb48] sm:$0xff] %v3023_v41  ;;  %v3027_v43 = vld [vmem:[%s6414_s1 + $0x358] sm:$0xff]  ;;  %v3029_v44 = vld [vmem:[%s6414_s1 + $0x360] sm:$0xff] }
  0xb7   :  { %3026 = vst [vmem:[%s6413_s2 + $0xb50] sm:$0xff] %v3025_v42  ;;  %v3031_v45 = vld [vmem:[%s6414_s1 + $0x368] sm:$0xff]  ;;  %3028 = vst [vmem:[%s6413_s2 + $0xb58] sm:$0xff] %v3027_v43  ;;  %v3033_v46 = vld [vmem:[%s6414_s1 + $0x370] sm:$0xff] }
  0xb8   :  { %3030 = vst [vmem:[%s6413_s2 + $0xb60] sm:$0xff] %v3029_v44  ;;  %3032 = vst [vmem:[%s6413_s2 + $0xb68] sm:$0xff] %v3031_v45  ;;  %v3035_v47 = vld [vmem:[%s6414_s1 + $0x378] sm:$0xff]  ;;  %v3037_v48 = vld [vmem:[%s6414_s1 + $0x380] sm:$0xff] }
  0xb9   :  { %3034 = vst [vmem:[%s6413_s2 + $0xb70] sm:$0xff] %v3033_v46  ;;  %3036 = vst [vmem:[%s6413_s2 + $0xb78] sm:$0xff] %v3035_v47  ;;  %v3039_v49 = vld [vmem:[%s6414_s1 + $0x388] sm:$0xff]  ;;  %v3041_v50 = vld [vmem:[%s6414_s1 + $0x390] sm:$0xff] }
  0xba   :  { %3038 = vst [vmem:[%s6413_s2 + $0xb80] sm:$0xff] %v3037_v48  ;;  %v3043_v51 = vld [vmem:[%s6414_s1 + $0x398] sm:$0xff]  ;;  %3040 = vst [vmem:[%s6413_s2 + $0xb88] sm:$0xff] %v3039_v49  ;;  %v3045_v52 = vld [vmem:[%s6414_s1 + $0x3a0] sm:$0xff] }
  0xbb   :  { %3042 = vst [vmem:[%s6413_s2 + $0xb90] sm:$0xff] %v3041_v50  ;;  %3044 = vst [vmem:[%s6413_s2 + $0xb98] sm:$0xff] %v3043_v51  ;;  %v3047_v53 = vld [vmem:[%s6414_s1 + $0x3a8] sm:$0xff]  ;;  %v3049_v54 = vld [vmem:[%s6414_s1 + $0x3b0] sm:$0xff] }
  0xbc   :  { %3046 = vst [vmem:[%s6413_s2 + $0xba0] sm:$0xff] %v3045_v52  ;;  %3048 = vst [vmem:[%s6413_s2 + $0xba8] sm:$0xff] %v3047_v53  ;;  %v3051_v55 = vld [vmem:[%s6414_s1 + $0x3b8] sm:$0xff]  ;;  %v3053_v56 = vld [vmem:[%s6414_s1 + $0x3c0] sm:$0xff] }
  0xbd   :  { %3050 = vst [vmem:[%s6413_s2 + $0xbb0] sm:$0xff] %v3049_v54  ;;  %v3055_v57 = vld [vmem:[%s6414_s1 + $0x3c8] sm:$0xff]  ;;  %3052 = vst [vmem:[%s6413_s2 + $0xbb8] sm:$0xff] %v3051_v55  ;;  %v3057_v58 = vld [vmem:[%s6414_s1 + $0x3d0] sm:$0xff] }
  0xbe   :  { %3054 = vst [vmem:[%s6413_s2 + $0xbc0] sm:$0xff] %v3053_v56  ;;  %3056 = vst [vmem:[%s6413_s2 + $0xbc8] sm:$0xff] %v3055_v57  ;;  %v3059_v59 = vld [vmem:[%s6414_s1 + $0x3d8] sm:$0xff]  ;;  %v3061_v60 = vld [vmem:[%s6414_s1 + $0x3e0] sm:$0xff] }
  0xbf   :  { %3058 = vst [vmem:[%s6413_s2 + $0xbd0] sm:$0xff] %v3057_v58  ;;  %3060 = vst [vmem:[%s6413_s2 + $0xbd8] sm:$0xff] %v3059_v59  ;;  %v3063_v61 = vld [vmem:[%s6414_s1 + $0x3e8] sm:$0xff]  ;;  %v3065_v62 = vld [vmem:[%s6414_s1 + $0x3f0] sm:$0xff] }
  0xc0   :  { %3062 = vst [vmem:[%s6413_s2 + $0xbe0] sm:$0xff] %v3061_v60  ;;  %v3067_v63 = vld [vmem:[%s6414_s1 + $0x3f8] sm:$0xff]  ;;  %3064 = vst [vmem:[%s6413_s2 + $0xbe8] sm:$0xff] %v3063_v61  ;;  %v3069_v0 = vld [vmem:[%s6414_s1 + $0x400] sm:$0xff] }
  0xc1   :  { %3066 = vst [vmem:[%s6413_s2 + $0xbf0] sm:$0xff] %v3065_v62  ;;  %3068 = vst [vmem:[%s6413_s2 + $0xbf8] sm:$0xff] %v3067_v63  ;;  %v3071_v1 = vld [vmem:[%s6414_s1 + $0x408] sm:$0xff]  ;;  %v3073_v2 = vld [vmem:[%s6414_s1 + $0x410] sm:$0xff] }
  0xc2   :  { %3070 = vst [vmem:[%s6413_s2 + $0xc00] sm:$0xff] %v3069_v0  ;;  %3072 = vst [vmem:[%s6413_s2 + $0xc08] sm:$0xff] %v3071_v1  ;;  %v3075_v3 = vld [vmem:[%s6414_s1 + $0x418] sm:$0xff]  ;;  %v3077_v4 = vld [vmem:[%s6414_s1 + $0x420] sm:$0xff] }
  0xc3   :  { %3074 = vst [vmem:[%s6413_s2 + $0xc10] sm:$0xff] %v3073_v2  ;;  %v3079_v5 = vld [vmem:[%s6414_s1 + $0x428] sm:$0xff]  ;;  %3076 = vst [vmem:[%s6413_s2 + $0xc18] sm:$0xff] %v3075_v3  ;;  %v3081_v6 = vld [vmem:[%s6414_s1 + $0x430] sm:$0xff] }
  0xc4   :  { %3078 = vst [vmem:[%s6413_s2 + $0xc20] sm:$0xff] %v3077_v4  ;;  %3080 = vst [vmem:[%s6413_s2 + $0xc28] sm:$0xff] %v3079_v5  ;;  %v3083_v7 = vld [vmem:[%s6414_s1 + $0x438] sm:$0xff]  ;;  %v3085_v8 = vld [vmem:[%s6414_s1 + $0x440] sm:$0xff] }
  0xc5   :  { %3082 = vst [vmem:[%s6413_s2 + $0xc30] sm:$0xff] %v3081_v6  ;;  %3084 = vst [vmem:[%s6413_s2 + $0xc38] sm:$0xff] %v3083_v7  ;;  %v3087_v9 = vld [vmem:[%s6414_s1 + $0x448] sm:$0xff]  ;;  %v3089_v10 = vld [vmem:[%s6414_s1 + $0x450] sm:$0xff] }
  0xc6   :  { %3086 = vst [vmem:[%s6413_s2 + $0xc40] sm:$0xff] %v3085_v8  ;;  %v3091_v11 = vld [vmem:[%s6414_s1 + $0x458] sm:$0xff]  ;;  %3088 = vst [vmem:[%s6413_s2 + $0xc48] sm:$0xff] %v3087_v9  ;;  %v3093_v12 = vld [vmem:[%s6414_s1 + $0x460] sm:$0xff] }
  0xc7   :  { %3090 = vst [vmem:[%s6413_s2 + $0xc50] sm:$0xff] %v3089_v10  ;;  %3092 = vst [vmem:[%s6413_s2 + $0xc58] sm:$0xff] %v3091_v11  ;;  %v3095_v13 = vld [vmem:[%s6414_s1 + $0x468] sm:$0xff]  ;;  %v3097_v14 = vld [vmem:[%s6414_s1 + $0x470] sm:$0xff] }
  0xc8   :  { %3094 = vst [vmem:[%s6413_s2 + $0xc60] sm:$0xff] %v3093_v12  ;;  %3096 = vst [vmem:[%s6413_s2 + $0xc68] sm:$0xff] %v3095_v13  ;;  %v3099_v15 = vld [vmem:[%s6414_s1 + $0x478] sm:$0xff]  ;;  %v3101_v16 = vld [vmem:[%s6414_s1 + $0x480] sm:$0xff] }
  0xc9   :  { %3098 = vst [vmem:[%s6413_s2 + $0xc70] sm:$0xff] %v3097_v14  ;;  %v3103_v17 = vld [vmem:[%s6414_s1 + $0x488] sm:$0xff]  ;;  %3100 = vst [vmem:[%s6413_s2 + $0xc78] sm:$0xff] %v3099_v15  ;;  %v3105_v18 = vld [vmem:[%s6414_s1 + $0x490] sm:$0xff] }
  0xca   :  { %3102 = vst [vmem:[%s6413_s2 + $0xc80] sm:$0xff] %v3101_v16  ;;  %3104 = vst [vmem:[%s6413_s2 + $0xc88] sm:$0xff] %v3103_v17  ;;  %v3107_v19 = vld [vmem:[%s6414_s1 + $0x498] sm:$0xff]  ;;  %v3109_v20 = vld [vmem:[%s6414_s1 + $0x4a0] sm:$0xff] }
  0xcb   :  { %3106 = vst [vmem:[%s6413_s2 + $0xc90] sm:$0xff] %v3105_v18  ;;  %3108 = vst [vmem:[%s6413_s2 + $0xc98] sm:$0xff] %v3107_v19  ;;  %v3111_v21 = vld [vmem:[%s6414_s1 + $0x4a8] sm:$0xff]  ;;  %v3113_v22 = vld [vmem:[%s6414_s1 + $0x4b0] sm:$0xff] }
  0xcc   :  { %3110 = vst [vmem:[%s6413_s2 + $0xca0] sm:$0xff] %v3109_v20  ;;  %v3115_v23 = vld [vmem:[%s6414_s1 + $0x4b8] sm:$0xff]  ;;  %3112 = vst [vmem:[%s6413_s2 + $0xca8] sm:$0xff] %v3111_v21  ;;  %v3117_v24 = vld [vmem:[%s6414_s1 + $0x4c0] sm:$0xff] }
  0xcd   :  { %3114 = vst [vmem:[%s6413_s2 + $0xcb0] sm:$0xff] %v3113_v22  ;;  %3116 = vst [vmem:[%s6413_s2 + $0xcb8] sm:$0xff] %v3115_v23  ;;  %v3119_v25 = vld [vmem:[%s6414_s1 + $0x4c8] sm:$0xff]  ;;  %v3121_v26 = vld [vmem:[%s6414_s1 + $0x4d0] sm:$0xff] }
  0xce   :  { %3118 = vst [vmem:[%s6413_s2 + $0xcc0] sm:$0xff] %v3117_v24  ;;  %3120 = vst [vmem:[%s6413_s2 + $0xcc8] sm:$0xff] %v3119_v25  ;;  %v3123_v27 = vld [vmem:[%s6414_s1 + $0x4d8] sm:$0xff]  ;;  %v3125_v28 = vld [vmem:[%s6414_s1 + $0x4e0] sm:$0xff] }
  0xcf   :  { %3122 = vst [vmem:[%s6413_s2 + $0xcd0] sm:$0xff] %v3121_v26  ;;  %v3127_v29 = vld [vmem:[%s6414_s1 + $0x4e8] sm:$0xff]  ;;  %3124 = vst [vmem:[%s6413_s2 + $0xcd8] sm:$0xff] %v3123_v27  ;;  %v3129_v30 = vld [vmem:[%s6414_s1 + $0x4f0] sm:$0xff] }
  0xd0   :  { %3126 = vst [vmem:[%s6413_s2 + $0xce0] sm:$0xff] %v3125_v28  ;;  %3128 = vst [vmem:[%s6413_s2 + $0xce8] sm:$0xff] %v3127_v29  ;;  %v3131_v31 = vld [vmem:[%s6414_s1 + $0x4f8] sm:$0xff]  ;;  %v3133_v32 = vld [vmem:[%s6414_s1 + $0x500] sm:$0xff] }
  0xd1   :  { %3130 = vst [vmem:[%s6413_s2 + $0xcf0] sm:$0xff] %v3129_v30  ;;  %3132 = vst [vmem:[%s6413_s2 + $0xcf8] sm:$0xff] %v3131_v31  ;;  %v3135_v33 = vld [vmem:[%s6414_s1 + $0x508] sm:$0xff]  ;;  %v3137_v34 = vld [vmem:[%s6414_s1 + $0x510] sm:$0xff] }
  0xd2   :  { %3134 = vst [vmem:[%s6413_s2 + $0xd00] sm:$0xff] %v3133_v32  ;;  %v3139_v35 = vld [vmem:[%s6414_s1 + $0x518] sm:$0xff]  ;;  %3136 = vst [vmem:[%s6413_s2 + $0xd08] sm:$0xff] %v3135_v33  ;;  %v3141_v36 = vld [vmem:[%s6414_s1 + $0x520] sm:$0xff] }
  0xd3   :  { %3138 = vst [vmem:[%s6413_s2 + $0xd10] sm:$0xff] %v3137_v34  ;;  %3140 = vst [vmem:[%s6413_s2 + $0xd18] sm:$0xff] %v3139_v35  ;;  %v3143_v37 = vld [vmem:[%s6414_s1 + $0x528] sm:$0xff]  ;;  %v3145_v38 = vld [vmem:[%s6414_s1 + $0x530] sm:$0xff] }
  0xd4   :  { %3142 = vst [vmem:[%s6413_s2 + $0xd20] sm:$0xff] %v3141_v36  ;;  %3144 = vst [vmem:[%s6413_s2 + $0xd28] sm:$0xff] %v3143_v37  ;;  %v3147_v39 = vld [vmem:[%s6414_s1 + $0x538] sm:$0xff]  ;;  %v3149_v40 = vld [vmem:[%s6414_s1 + $0x540] sm:$0xff] }
  0xd5   :  { %3146 = vst [vmem:[%s6413_s2 + $0xd30] sm:$0xff] %v3145_v38  ;;  %v3151_v41 = vld [vmem:[%s6414_s1 + $0x548] sm:$0xff]  ;;  %3148 = vst [vmem:[%s6413_s2 + $0xd38] sm:$0xff] %v3147_v39  ;;  %v3153_v42 = vld [vmem:[%s6414_s1 + $0x550] sm:$0xff] }
  0xd6   :  { %3150 = vst [vmem:[%s6413_s2 + $0xd40] sm:$0xff] %v3149_v40  ;;  %3152 = vst [vmem:[%s6413_s2 + $0xd48] sm:$0xff] %v3151_v41  ;;  %v3155_v43 = vld [vmem:[%s6414_s1 + $0x558] sm:$0xff]  ;;  %v3157_v44 = vld [vmem:[%s6414_s1 + $0x560] sm:$0xff] }
  0xd7   :  { %3154 = vst [vmem:[%s6413_s2 + $0xd50] sm:$0xff] %v3153_v42  ;;  %3156 = vst [vmem:[%s6413_s2 + $0xd58] sm:$0xff] %v3155_v43  ;;  %v3159_v45 = vld [vmem:[%s6414_s1 + $0x568] sm:$0xff]  ;;  %v3161_v46 = vld [vmem:[%s6414_s1 + $0x570] sm:$0xff] }
  0xd8   :  { %3158 = vst [vmem:[%s6413_s2 + $0xd60] sm:$0xff] %v3157_v44  ;;  %v3163_v47 = vld [vmem:[%s6414_s1 + $0x578] sm:$0xff]  ;;  %3160 = vst [vmem:[%s6413_s2 + $0xd68] sm:$0xff] %v3159_v45  ;;  %v3165_v48 = vld [vmem:[%s6414_s1 + $0x580] sm:$0xff] }
  0xd9   :  { %3162 = vst [vmem:[%s6413_s2 + $0xd70] sm:$0xff] %v3161_v46  ;;  %3164 = vst [vmem:[%s6413_s2 + $0xd78] sm:$0xff] %v3163_v47  ;;  %v3167_v49 = vld [vmem:[%s6414_s1 + $0x588] sm:$0xff]  ;;  %v3169_v50 = vld [vmem:[%s6414_s1 + $0x590] sm:$0xff] }
  0xda   :  { %3166 = vst [vmem:[%s6413_s2 + $0xd80] sm:$0xff] %v3165_v48  ;;  %3168 = vst [vmem:[%s6413_s2 + $0xd88] sm:$0xff] %v3167_v49  ;;  %v3171_v51 = vld [vmem:[%s6414_s1 + $0x598] sm:$0xff]  ;;  %v3173_v52 = vld [vmem:[%s6414_s1 + $0x5a0] sm:$0xff] }
  0xdb   :  { %3170 = vst [vmem:[%s6413_s2 + $0xd90] sm:$0xff] %v3169_v50  ;;  %v3175_v53 = vld [vmem:[%s6414_s1 + $0x5a8] sm:$0xff]  ;;  %3172 = vst [vmem:[%s6413_s2 + $0xd98] sm:$0xff] %v3171_v51  ;;  %v3177_v54 = vld [vmem:[%s6414_s1 + $0x5b0] sm:$0xff] }
  0xdc   :  { %3174 = vst [vmem:[%s6413_s2 + $0xda0] sm:$0xff] %v3173_v52  ;;  %3176 = vst [vmem:[%s6413_s2 + $0xda8] sm:$0xff] %v3175_v53  ;;  %v3179_v55 = vld [vmem:[%s6414_s1 + $0x5b8] sm:$0xff]  ;;  %v3181_v56 = vld [vmem:[%s6414_s1 + $0x5c0] sm:$0xff] }
  0xdd   :  { %3178 = vst [vmem:[%s6413_s2 + $0xdb0] sm:$0xff] %v3177_v54  ;;  %3180 = vst [vmem:[%s6413_s2 + $0xdb8] sm:$0xff] %v3179_v55  ;;  %v3183_v57 = vld [vmem:[%s6414_s1 + $0x5c8] sm:$0xff]  ;;  %v3185_v58 = vld [vmem:[%s6414_s1 + $0x5d0] sm:$0xff] }
  0xde   :  { %3182 = vst [vmem:[%s6413_s2 + $0xdc0] sm:$0xff] %v3181_v56  ;;  %v3187_v59 = vld [vmem:[%s6414_s1 + $0x5d8] sm:$0xff]  ;;  %3184 = vst [vmem:[%s6413_s2 + $0xdc8] sm:$0xff] %v3183_v57  ;;  %v3189_v60 = vld [vmem:[%s6414_s1 + $0x5e0] sm:$0xff] }
  0xdf   :  { %3186 = vst [vmem:[%s6413_s2 + $0xdd0] sm:$0xff] %v3185_v58  ;;  %3188 = vst [vmem:[%s6413_s2 + $0xdd8] sm:$0xff] %v3187_v59  ;;  %v3191_v61 = vld [vmem:[%s6414_s1 + $0x5e8] sm:$0xff]  ;;  %v3193_v62 = vld [vmem:[%s6414_s1 + $0x5f0] sm:$0xff] }
  0xe0   :  { %3190 = vst [vmem:[%s6413_s2 + $0xde0] sm:$0xff] %v3189_v60  ;;  %3192 = vst [vmem:[%s6413_s2 + $0xde8] sm:$0xff] %v3191_v61  ;;  %v3195_v63 = vld [vmem:[%s6414_s1 + $0x5f8] sm:$0xff]  ;;  %v3197_v0 = vld [vmem:[%s6414_s1 + $0x600] sm:$0xff] }
  0xe1   :  { %3194 = vst [vmem:[%s6413_s2 + $0xdf0] sm:$0xff] %v3193_v62  ;;  %v3199_v1 = vld [vmem:[%s6414_s1 + $0x608] sm:$0xff]  ;;  %3196 = vst [vmem:[%s6413_s2 + $0xdf8] sm:$0xff] %v3195_v63  ;;  %v3201_v2 = vld [vmem:[%s6414_s1 + $0x610] sm:$0xff] }
  0xe2   :  { %3198 = vst [vmem:[%s6413_s2 + $0xe00] sm:$0xff] %v3197_v0  ;;  %3200 = vst [vmem:[%s6413_s2 + $0xe08] sm:$0xff] %v3199_v1  ;;  %v3203_v3 = vld [vmem:[%s6414_s1 + $0x618] sm:$0xff]  ;;  %v3205_v4 = vld [vmem:[%s6414_s1 + $0x620] sm:$0xff] }
  0xe3   :  { %3202 = vst [vmem:[%s6413_s2 + $0xe10] sm:$0xff] %v3201_v2  ;;  %3204 = vst [vmem:[%s6413_s2 + $0xe18] sm:$0xff] %v3203_v3  ;;  %v3207_v5 = vld [vmem:[%s6414_s1 + $0x628] sm:$0xff]  ;;  %v3209_v6 = vld [vmem:[%s6414_s1 + $0x630] sm:$0xff] }
  0xe4   :  { %3206 = vst [vmem:[%s6413_s2 + $0xe20] sm:$0xff] %v3205_v4  ;;  %v3211_v7 = vld [vmem:[%s6414_s1 + $0x638] sm:$0xff]  ;;  %3208 = vst [vmem:[%s6413_s2 + $0xe28] sm:$0xff] %v3207_v5  ;;  %v3213_v8 = vld [vmem:[%s6414_s1 + $0x640] sm:$0xff] }
  0xe5   :  { %3210 = vst [vmem:[%s6413_s2 + $0xe30] sm:$0xff] %v3209_v6  ;;  %3212 = vst [vmem:[%s6413_s2 + $0xe38] sm:$0xff] %v3211_v7  ;;  %v3215_v9 = vld [vmem:[%s6414_s1 + $0x648] sm:$0xff]  ;;  %v3217_v10 = vld [vmem:[%s6414_s1 + $0x650] sm:$0xff] }
  0xe6   :  { %3214 = vst [vmem:[%s6413_s2 + $0xe40] sm:$0xff] %v3213_v8  ;;  %3216 = vst [vmem:[%s6413_s2 + $0xe48] sm:$0xff] %v3215_v9  ;;  %v3219_v11 = vld [vmem:[%s6414_s1 + $0x658] sm:$0xff]  ;;  %v3221_v12 = vld [vmem:[%s6414_s1 + $0x660] sm:$0xff] }
  0xe7   :  { %3218 = vst [vmem:[%s6413_s2 + $0xe50] sm:$0xff] %v3217_v10  ;;  %v3223_v13 = vld [vmem:[%s6414_s1 + $0x668] sm:$0xff]  ;;  %3220 = vst [vmem:[%s6413_s2 + $0xe58] sm:$0xff] %v3219_v11  ;;  %v3225_v14 = vld [vmem:[%s6414_s1 + $0x670] sm:$0xff] }
  0xe8   :  { %3222 = vst [vmem:[%s6413_s2 + $0xe60] sm:$0xff] %v3221_v12  ;;  %3224 = vst [vmem:[%s6413_s2 + $0xe68] sm:$0xff] %v3223_v13  ;;  %v3227_v15 = vld [vmem:[%s6414_s1 + $0x678] sm:$0xff]  ;;  %v3229_v16 = vld [vmem:[%s6414_s1 + $0x680] sm:$0xff] }
  0xe9   :  { %3226 = vst [vmem:[%s6413_s2 + $0xe70] sm:$0xff] %v3225_v14  ;;  %3228 = vst [vmem:[%s6413_s2 + $0xe78] sm:$0xff] %v3227_v15  ;;  %v3231_v17 = vld [vmem:[%s6414_s1 + $0x688] sm:$0xff]  ;;  %v3233_v18 = vld [vmem:[%s6414_s1 + $0x690] sm:$0xff] }
  0xea   :  { %3230 = vst [vmem:[%s6413_s2 + $0xe80] sm:$0xff] %v3229_v16  ;;  %v3235_v19 = vld [vmem:[%s6414_s1 + $0x698] sm:$0xff]  ;;  %3232 = vst [vmem:[%s6413_s2 + $0xe88] sm:$0xff] %v3231_v17  ;;  %v3237_v20 = vld [vmem:[%s6414_s1 + $0x6a0] sm:$0xff] }
  0xeb   :  { %3234 = vst [vmem:[%s6413_s2 + $0xe90] sm:$0xff] %v3233_v18  ;;  %3236 = vst [vmem:[%s6413_s2 + $0xe98] sm:$0xff] %v3235_v19  ;;  %v3239_v21 = vld [vmem:[%s6414_s1 + $0x6a8] sm:$0xff]  ;;  %v3241_v22 = vld [vmem:[%s6414_s1 + $0x6b0] sm:$0xff] }
  0xec   :  { %3238 = vst [vmem:[%s6413_s2 + $0xea0] sm:$0xff] %v3237_v20  ;;  %3240 = vst [vmem:[%s6413_s2 + $0xea8] sm:$0xff] %v3239_v21  ;;  %v3243_v23 = vld [vmem:[%s6414_s1 + $0x6b8] sm:$0xff]  ;;  %v3245_v24 = vld [vmem:[%s6414_s1 + $0x6c0] sm:$0xff] }
  0xed   :  { %3242 = vst [vmem:[%s6413_s2 + $0xeb0] sm:$0xff] %v3241_v22  ;;  %v3247_v25 = vld [vmem:[%s6414_s1 + $0x6c8] sm:$0xff]  ;;  %3244 = vst [vmem:[%s6413_s2 + $0xeb8] sm:$0xff] %v3243_v23  ;;  %v3249_v26 = vld [vmem:[%s6414_s1 + $0x6d0] sm:$0xff] }
  0xee   :  { %3246 = vst [vmem:[%s6413_s2 + $0xec0] sm:$0xff] %v3245_v24  ;;  %3248 = vst [vmem:[%s6413_s2 + $0xec8] sm:$0xff] %v3247_v25  ;;  %v3251_v27 = vld [vmem:[%s6414_s1 + $0x6d8] sm:$0xff]  ;;  %v3253_v28 = vld [vmem:[%s6414_s1 + $0x6e0] sm:$0xff] }
  0xef   :  { %3250 = vst [vmem:[%s6413_s2 + $0xed0] sm:$0xff] %v3249_v26  ;;  %3252 = vst [vmem:[%s6413_s2 + $0xed8] sm:$0xff] %v3251_v27  ;;  %v3255_v29 = vld [vmem:[%s6414_s1 + $0x6e8] sm:$0xff]  ;;  %v3257_v30 = vld [vmem:[%s6414_s1 + $0x6f0] sm:$0xff] }
  0xf0   :  { %3254 = vst [vmem:[%s6413_s2 + $0xee0] sm:$0xff] %v3253_v28  ;;  %v3259_v31 = vld [vmem:[%s6414_s1 + $0x6f8] sm:$0xff]  ;;  %3256 = vst [vmem:[%s6413_s2 + $0xee8] sm:$0xff] %v3255_v29  ;;  %v3261_v32 = vld [vmem:[%s6414_s1 + $0x700] sm:$0xff] }
  0xf1   :  { %3258 = vst [vmem:[%s6413_s2 + $0xef0] sm:$0xff] %v3257_v30  ;;  %3260 = vst [vmem:[%s6413_s2 + $0xef8] sm:$0xff] %v3259_v31  ;;  %v3263_v33 = vld [vmem:[%s6414_s1 + $0x708] sm:$0xff]  ;;  %v3265_v34 = vld [vmem:[%s6414_s1 + $0x710] sm:$0xff] }
  0xf2   :  { %3262 = vst [vmem:[%s6413_s2 + $0xf00] sm:$0xff] %v3261_v32  ;;  %3264 = vst [vmem:[%s6413_s2 + $0xf08] sm:$0xff] %v3263_v33  ;;  %v3267_v35 = vld [vmem:[%s6414_s1 + $0x718] sm:$0xff]  ;;  %v3269_v36 = vld [vmem:[%s6414_s1 + $0x720] sm:$0xff] }
  0xf3   :  { %3266 = vst [vmem:[%s6413_s2 + $0xf10] sm:$0xff] %v3265_v34  ;;  %v3271_v37 = vld [vmem:[%s6414_s1 + $0x728] sm:$0xff]  ;;  %3268 = vst [vmem:[%s6413_s2 + $0xf18] sm:$0xff] %v3267_v35  ;;  %v3273_v38 = vld [vmem:[%s6414_s1 + $0x730] sm:$0xff] }
  0xf4   :  { %3270 = vst [vmem:[%s6413_s2 + $0xf20] sm:$0xff] %v3269_v36  ;;  %3272 = vst [vmem:[%s6413_s2 + $0xf28] sm:$0xff] %v3271_v37  ;;  %v3275_v39 = vld [vmem:[%s6414_s1 + $0x738] sm:$0xff]  ;;  %v3277_v40 = vld [vmem:[%s6414_s1 + $0x740] sm:$0xff] }
  0xf5   :  { %3274 = vst [vmem:[%s6413_s2 + $0xf30] sm:$0xff] %v3273_v38  ;;  %3276 = vst [vmem:[%s6413_s2 + $0xf38] sm:$0xff] %v3275_v39  ;;  %v3279_v41 = vld [vmem:[%s6414_s1 + $0x748] sm:$0xff]  ;;  %v3281_v42 = vld [vmem:[%s6414_s1 + $0x750] sm:$0xff] }
  0xf6   :  { %3278 = vst [vmem:[%s6413_s2 + $0xf40] sm:$0xff] %v3277_v40  ;;  %v3283_v43 = vld [vmem:[%s6414_s1 + $0x758] sm:$0xff]  ;;  %3280 = vst [vmem:[%s6413_s2 + $0xf48] sm:$0xff] %v3279_v41  ;;  %v3285_v44 = vld [vmem:[%s6414_s1 + $0x760] sm:$0xff] }
  0xf7   :  { %3282 = vst [vmem:[%s6413_s2 + $0xf50] sm:$0xff] %v3281_v42  ;;  %3284 = vst [vmem:[%s6413_s2 + $0xf58] sm:$0xff] %v3283_v43  ;;  %v3287_v45 = vld [vmem:[%s6414_s1 + $0x768] sm:$0xff]  ;;  %v3289_v46 = vld [vmem:[%s6414_s1 + $0x770] sm:$0xff] }
  0xf8   :  { %3286 = vst [vmem:[%s6413_s2 + $0xf60] sm:$0xff] %v3285_v44  ;;  %3288 = vst [vmem:[%s6413_s2 + $0xf68] sm:$0xff] %v3287_v45  ;;  %v3291_v47 = vld [vmem:[%s6414_s1 + $0x778] sm:$0xff]  ;;  %v3293_v48 = vld [vmem:[%s6414_s1 + $0x780] sm:$0xff] }
  0xf9   :  { %3290 = vst [vmem:[%s6413_s2 + $0xf70] sm:$0xff] %v3289_v46  ;;  %v3295_v49 = vld [vmem:[%s6414_s1 + $0x788] sm:$0xff]  ;;  %3292 = vst [vmem:[%s6413_s2 + $0xf78] sm:$0xff] %v3291_v47  ;;  %v3297_v50 = vld [vmem:[%s6414_s1 + $0x790] sm:$0xff] }
  0xfa   :  { %3294 = vst [vmem:[%s6413_s2 + $0xf80] sm:$0xff] %v3293_v48  ;;  %3296 = vst [vmem:[%s6413_s2 + $0xf88] sm:$0xff] %v3295_v49  ;;  %v3299_v51 = vld [vmem:[%s6414_s1 + $0x798] sm:$0xff]  ;;  %v3301_v52 = vld [vmem:[%s6414_s1 + $0x7a0] sm:$0xff] }
  0xfb   :  { %3298 = vst [vmem:[%s6413_s2 + $0xf90] sm:$0xff] %v3297_v50  ;;  %3300 = vst [vmem:[%s6413_s2 + $0xf98] sm:$0xff] %v3299_v51  ;;  %v3303_v53 = vld [vmem:[%s6414_s1 + $0x7a8] sm:$0xff]  ;;  %v3305_v54 = vld [vmem:[%s6414_s1 + $0x7b0] sm:$0xff] }
  0xfc   :  { %3302 = vst [vmem:[%s6413_s2 + $0xfa0] sm:$0xff] %v3301_v52  ;;  %v3307_v55 = vld [vmem:[%s6414_s1 + $0x7b8] sm:$0xff]  ;;  %3304 = vst [vmem:[%s6413_s2 + $0xfa8] sm:$0xff] %v3303_v53  ;;  %v3309_v56 = vld [vmem:[%s6414_s1 + $0x7c0] sm:$0xff] }
  0xfd   :  { %3306 = vst [vmem:[%s6413_s2 + $0xfb0] sm:$0xff] %v3305_v54  ;;  %3308 = vst [vmem:[%s6413_s2 + $0xfb8] sm:$0xff] %v3307_v55  ;;  %v3311_v57 = vld [vmem:[%s6414_s1 + $0x7c8] sm:$0xff]  ;;  %v3313_v58 = vld [vmem:[%s6414_s1 + $0x7d0] sm:$0xff] }
  0xfe   :  { %3310 = vst [vmem:[%s6413_s2 + $0xfc0] sm:$0xff] %v3309_v56  ;;  %3312 = vst [vmem:[%s6413_s2 + $0xfc8] sm:$0xff] %v3311_v57  ;;  %v3315_v59 = vld [vmem:[%s6414_s1 + $0x7d8] sm:$0xff]  ;;  %v3317_v60 = vld [vmem:[%s6414_s1 + $0x7e0] sm:$0xff] }
  0xff   :  { %3314 = vst [vmem:[%s6413_s2 + $0xfd0] sm:$0xff] %v3313_v58  ;;  %v3319_v61 = vld [vmem:[%s6414_s1 + $0x7e8] sm:$0xff]  ;;  %3316 = vst [vmem:[%s6413_s2 + $0xfd8] sm:$0xff] %v3315_v59  ;;  %v3321_v62 = vld [vmem:[%s6414_s1 + $0x7f0] sm:$0xff] }
 0x100   :  { %3318 = vst [vmem:[%s6413_s2 + $0xfe0] sm:$0xff] %v3317_v60  ;;  %3320 = vst [vmem:[%s6413_s2 + $0xfe8] sm:$0xff] %v3319_v61  ;;  %v3323_v63 = vld [vmem:[%s6414_s1 + $0x7f8] sm:$0xff] }
 0x101   :  { %3322 = vst [vmem:[%s6413_s2 + $0xff0] sm:$0xff] %v3321_v62  ;;  %3324 = vst [vmem:[%s6413_s2 + $0xff8] sm:$0xff] %v3323_v63 }

// kernel: complex_conv_transpose_2d.1
= control target key start
LH: loop header
LB: loop body
LE: loop exit
PB: predicated region body
PF: predicated region fallthrough
CT: control target
= control target key end

     0   :  { %s866_s9 = smov 0   ;;  %s868_s10 = smov 0   ;;  %s983_s0 = inlined_call_operand.vmem [shape: bf16[2,1,8,384], index: 0, kind: input, shape index: {}]   ;;  %s984_s1 = inlined_call_operand.vmem [shape: bf16[32,72], index: 1, kind: input, shape index: {}]   ;;  %s985_s2 = inlined_call_operand.vmem [shape: f32[2,1,32,288], index: 2, kind: output, shape index: {}]  }
   0x1   :  { %s870_s11 = smov 0  }
   0x2 LB: > { %s24_s12 = sadd.s32 1, %s836_s10  ;;  %p727_p0 = scmp.ge.s32.totalorder %s840_s11, 1  ;;  %s840_s11 = sphi %s870_s11, %s12_s11   ;;  %s836_s10 = sphi %s868_s10, %s987_s10   ;;  %s832_s9 = sphi %s866_s9, %s986_s9  }
   0x3   : > { %p26_p1 = scmp.ge.s32.totalorder %s24_s12, 2  ;;  %p132_p2 = scmp.lt.s32.totalorder %s840_s11, 3 }
   0x5   : > { %s989_s12 = smov (%p26_p1, %s24_s12), 0  ;;  %p133_p3 = pnand %p727_p0, %p132_p2 }
   0x6   : > { %p162_p4 = scmp.lt.s32.totalorder (!%p133_p3), %s832_s9, 1  ;;  %s842_s17 = smov (!%p133_p3), 90  }
   0x7   : > { %136 = sbr.rel (%p133_p3) target bundleno = 387 (0x183), region = 28  ;;  %s843_s18 = smov (!%p133_p3), 92  }
   0x8   : > { %s844_s19 = smov (!%p133_p3), 91   ;;  %s845_s20 = smov (!%p133_p3), 109  }
   0x9   : > { %s846_s21 = smov (!%p133_p3), 108   ;;  %s847_s22 = smov (!%p133_p3), 126  }
   0xa   : > { %s848_s25 = smov (!%p133_p3), 110   ;;  %s850_s26 = smov (!%p133_p3), 127  }
   0xc   : > { %s991_s9 = smov (!%p162_p4, %s832_s9), 1  ;;  %vm184_vm0 = vcmask 257024   ;;  %v913_v9 = vld [vmem:[%s984_s1] sm:$0xff]   ;;  %vm427_vm1 = vcmask 588800   ;;  %v849_v11 = vmov 0   ;;  %vm196_vm2 = vcmask 1043456  }
   0xd   : > { %s776_s13 = smul.u32 12, %s991_s9  ;;  %771 = vmatprep.mubr.msk.bf16.mxu1 %vm427_vm1, %v913_v9  ;;  %476 = vmatprep.mubr.bf16.mxu0 %v849_v11  ;;  %vm317_vm3 = vcmask 736256   ;;  %vm283_vm4 = vcmask 752640   ;;  %vm300_vm5 = vcmask 744448   ;;  %vm249_vm6 = vcmask 891904  }
   0xe   : > { %vm266_vm7 = vcmask 883712   ;;  %vm215_vm8 = vcmask 1031168   ;;  %vm232_vm9 = vcmask 900096   ;;  %vm198_vm10 = vcmask 1039360   ;;  %s777_s29 = smul.u32 96, %s991_s9 }
   0xf   : > { %s890_s16 = scalar_lea.vmem %s983_s0, %s776_s13  ;;  %vm620_vm15 = vcmask 261120  }
  0x10   : > { %v893_v0 = vld [vmem:[%s890_s16] sm:$0xff]  ;;  %v307_v1 = vld [vmem:[%s890_s16 + $0x8] sm:$0xf]  ;;  %s956_s4 = scalar_lea.vmem %s985_s2, %s777_s29 }
  0x11   : > { %310 = vrot.lane.b32.xlu0 %v893_v0, %s842_s17  ;;  %276 = vrot.lane.b32.xlu1 %v893_v0, %s843_s18  ;;  %v273_v2 = vld [vmem:[%s890_s16 + $0x8] sm:$0xf] }
  0x12   : > { %v290_v3 = vld [vmem:[%s890_s16 + $0x8] sm:$0xf] }
  0x13   : > { %v239_v4 = vld [vmem:[%s890_s16 + $0x8] sm:$0xf] }
  0x14   : > { %v256_v5 = vld [vmem:[%s890_s16 + $0x8] sm:$0xf] }
  0x15   : > { %312 = vrot.lane.b32.xlu0 %v307_v1, %s842_s17  ;;  %278 = vrot.lane.b32.xlu1 %v273_v2, %s843_s18  ;;  %v182_v6 = vld [vmem:[%s890_s16 + $0x8] sm:$0xf] }
  0x16   : > { %185 = vst.msk [vmem:[#allocation2 + $0x8] sm:$0xf] %vm184_vm0, %v182_v6  ;;  %v205_v7 = vld [vmem:[%s890_s16 + $0x8] sm:$0xf] }
  0x17   : > { %v222_v8 = vld [vmem:[%s890_s16 + $0x8] sm:$0xf] }
  0x18   : > { %v187_v10 = vld [vmem:[%s890_s16 + $0x8] sm:$0xf] }
  0x19   : > { %293 = vrot.lane.b32.xlu0 %v893_v0, %s844_s19  ;;  %295 = vrot.lane.b32.xlu1 %v290_v3, %s844_s19 }
  0x1d   : > { %244 = vrot.lane.b32.xlu1 %v239_v4, %s845_s20  ;;  %242 = vrot.lane.b32.xlu0 %v893_v0, %s845_s20 }
  0x21   : > { %261 = vrot.lane.b32.xlu1 %v256_v5, %s846_s21  ;;  %259 = vrot.lane.b32.xlu0 %v893_v0, %s846_s21 }
  0x25   : > { %210 = vrot.lane.b32.xlu1 %v205_v7, %s847_s22  ;;  %208 = vrot.lane.b32.xlu0 %v893_v0, %s847_s22 }
  0x29   : > { %227 = vrot.lane.b32.xlu1 %v222_v8, %s848_s25  ;;  %225 = vrot.lane.b32.xlu0 %v893_v0, %s848_s25 }
  0x2d   : > { %192 = vrot.lane.b32.xlu1 %v187_v10, %s850_s26  ;;  %190 = vrot.lane.b32.xlu0 %v893_v0, %s850_s26 }
  0x83   : > { %v311_v12 = vpop.permute.xlu0 %310  ;;  %v277_v13 = vpop.permute.xlu1 %276 }
  0x84   : > { %v314_v16 = vrot.slane %v311_v12, 4  ;;  %v280_v17 = vrot.slane %v277_v13, 4 }
  0x87   : > { %v313_v14 = vpop.permute.xlu0 %312  ;;  %v279_v15 = vpop.permute.xlu1 %278 }
  0x88   : > { %v315_v18 = vrot.slane %v313_v14, 4  ;;  %322 = vst.msk [vmem:[#allocation2 + $0x68] sm:$0xf] %vm184_vm0, %v313_v14  ;;  %v281_v19 = vrot.slane %v279_v15, 4  ;;  %288 = vst.msk [vmem:[#allocation2 + $0x50] sm:$0xf] %vm184_vm0, %v279_v15 }
  0x8a   : > { %v316_v20 = vsel %vm196_vm2, %v314_v16, %v315_v18  ;;  %v282_v21 = vsel %vm196_vm2, %v280_v17, %v281_v19  ;;  %v817_v16 = vld [vmem:[%s984_s1 + $0x8] sm:$0xff]  }
  0x8b   : > { %v318_v22 = vsel %vm317_vm3, %v311_v12, %v316_v20  ;;  %v284_v23 = vsel %vm283_vm4, %v277_v13, %v282_v21  ;;  %v294_v24 = vpop.permute.xlu0 %293  ;;  %v296_v25 = vpop.permute.xlu1 %295 }
  0x8c   : > { %v297_v26 = vrot.slane %v294_v24, 4  ;;  %v298_v27 = vrot.slane %v296_v25, 4  ;;  %305 = vst.msk [vmem:[#allocation2 + $0x5c] sm:$0xf] %vm184_vm0, %v296_v25  ;;  %v745_v28 = vcombine.high %v318_v22, %v318_v22  ;;  %v744_v29 = vcombine.low %v318_v22, %v318_v22 }
  0x8e   : > { %v299_v30 = vsel %vm196_vm2, %v297_v26, %v298_v27  ;;  %747 = vmatprep.subr.msk.bf16.mxu0 %vm196_vm2, %v745_v28  ;;  %v436_v31 = vsel %vm196_vm2, %v744_v29, 0 }
  0x8f   : > { %v301_v32 = vsel %vm300_vm5, %v294_v24, %v299_v30  ;;  %v245_v33 = vpop.permute.xlu1 %244  ;;  %v243_v34 = vpop.permute.xlu0 %242  ;;  %v811_v35 = vld [vmem:[#allocation2 + $0x68] ss:$0 sps:$4 sm:$0xff]   ;;  %451 = vmatpush1.bf16.msra.mxu0 %v436_v31 }
  0x90   : > { %v247_v36 = vrot.slane %v245_v33, 4  ;;  %254 = vst.msk [vmem:[#allocation2 + $0x38] sm:$0xf] %vm184_vm0, %v245_v33  ;;  %v246_v37 = vrot.slane %v243_v34, 4  ;;  %v742_v38 = vcombine.high %v284_v23, %v301_v32  ;;  %v741_v39 = vcombine.low %v284_v23, %v301_v32  ;;  %775 = vmatprep.subr.msk.bf16.mxu1 %vm196_vm2, %v811_v35 }
  0x91   : > { %v442_v40 = vsel %vm196_vm2, %v811_v35, 0 }
  0x92   : > { %v248_v41 = vsel %vm196_vm2, %v246_v37, %v247_v36  ;;  %762 = vmatpush3.bf16.msra.mxu1 %v442_v40  ;;  %452 = vmatprep.subr.bf16.mxu0 %v742_v38 }
  0x93   : > { %v250_v42 = vsel %vm249_vm6, %v243_v34, %v248_v41  ;;  %v262_v43 = vpop.permute.xlu1 %261  ;;  %v260_v44 = vpop.permute.xlu0 %259  ;;  %v812_v45 = vld [vmem:[#allocation2 + $0x50] ss:$12 sps:$4 sm:$0xff]   ;;  %453 = vmatpush1.bf16.msra.mxu0 %v741_v39 }
  0x94   : > { %v264_v46 = vrot.slane %v262_v43, 4  ;;  %271 = vst.msk [vmem:[#allocation2 + $0x44] sm:$0xf] %vm184_vm0, %v262_v43  ;;  %v263_v47 = vrot.slane %v260_v44, 4  ;;  %763 = vmatprep.subr.bf16.mxu1 %v812_v45 }
  0x96   : > { %v265_v48 = vsel %vm196_vm2, %v263_v47, %v264_v46  ;;  %764 = vmatpush3.bf16.msra.mxu1 %v812_v45 }
  0x97   : > { %v267_v49 = vsel %vm266_vm7, %v260_v44, %v265_v48  ;;  %v211_v50 = vpop.permute.xlu1 %210  ;;  %v209_v51 = vpop.permute.xlu0 %208 }
  0x98   : > { %v213_v52 = vrot.slane %v211_v50, 4  ;;  %220 = vst.msk [vmem:[#allocation2 + $0x20] sm:$0xf] %vm184_vm0, %v211_v50  ;;  %v212_v53 = vrot.slane %v209_v51, 4  ;;  %v739_v54 = vcombine.high %v250_v42, %v267_v49  ;;  %v738_v55 = vcombine.low %v250_v42, %v267_v49 }
  0x9a   : > { %v214_v56 = vsel %vm196_vm2, %v212_v53, %v213_v52  ;;  %454 = vmatprep.subr.bf16.mxu0 %v739_v54 }
  0x9b   : > { %v216_v57 = vsel %vm215_vm8, %v209_v51, %v214_v56  ;;  %v228_v58 = vpop.permute.xlu1 %227  ;;  %v226_v59 = vpop.permute.xlu0 %225  ;;  %v813_v60 = vld [vmem:[#allocation2 + $0x38] ss:$12 sps:$4 sm:$0xff]   ;;  %455 = vmatpush1.bf16.msra.mxu0 %v738_v55 }
  0x9c   : > { %v230_v61 = vrot.slane %v228_v58, 4  ;;  %237 = vst.msk [vmem:[#allocation2 + $0x2c] sm:$0xf] %vm184_vm0, %v228_v58  ;;  %v229_v62 = vrot.slane %v226_v59, 4  ;;  %765 = vmatprep.subr.bf16.mxu1 %v813_v60 }
  0x9d   : > { %766 = vmatpush3.bf16.msra.mxu1 %v813_v60 }
  0x9e   : > { %v231_v63 = vsel %vm196_vm2, %v229_v62, %v230_v61 }
  0x9f   : > { %v233_v1 = vsel %vm232_vm9, %v226_v59, %v231_v63  ;;  %v193_v2 = vpop.permute.xlu1 %192  ;;  %v191_v3 = vpop.permute.xlu0 %190 }
  0xa0   : > { %v195_v4 = vrot.slane %v193_v2, 4  ;;  %203 = vst.msk [vmem:[#allocation2 + $0x14] sm:$0xf] %vm184_vm0, %v193_v2  ;;  %v194_v5 = vrot.slane %v191_v3, 4  ;;  %v736_v6 = vcombine.high %v216_v57, %v233_v1  ;;  %v735_v7 = vcombine.low %v216_v57, %v233_v1 }
  0xa2   : > { %v197_v8 = vsel %vm196_vm2, %v194_v5, %v195_v4  ;;  %456 = vmatprep.subr.bf16.mxu0 %v736_v6 }
  0xa3   : > { %v199_v10 = vsel %vm198_vm10, %v191_v3, %v197_v8  ;;  %v814_v12 = vld [vmem:[#allocation2 + $0x20] ss:$12 sps:$4 sm:$0xff]   ;;  %457 = vmatpush1.bf16.msra.mxu0 %v735_v7 }
  0xa4   : > { %v733_v13 = vcombine.high %v893_v0, %v199_v10  ;;  %v732_v14 = vcombine.low %v893_v0, %v199_v10  ;;  %767 = vmatprep.subr.bf16.mxu1 %v814_v12 }
  0xa5   : > { %768 = vmatpush3.bf16.msra.mxu1 %v814_v12 }
  0xa6   : > { %458 = vmatprep.subr.bf16.mxu0 %v733_v13 }
  0xa7   : > { %v815_v15 = vld [vmem:[#allocation2 + $0x8] ss:$12 sps:$4 sm:$0xff]   ;;  %459 = vmatpush1.bf16.msra.mxu0 %v732_v14 }
  0xa8   : > { %769 = vmatprep.subr.bf16.mxu1 %v815_v15 }
  0xa9   : > { %770 = vmatpush3.bf16.msra.mxu1 %v815_v15 }
  0xaa   : > { %748 = vmatmul.mubr.msk.bf16.vlgmr.msra.gmra.mxu0 %vm427_vm1, %v913_v9 }
  0xab   : > { %486 = vmatprep.mubr.bf16.mxu0 %v849_v11 }
  0xac   : > { %772 = vmatmul.mubr.msk.bf16.vlgmr.msra.gmra.mxu1 %vm427_vm1, %v817_v16 }
  0xb2   : > { %749 = vmatmul.mubr.msk.bf16.gmra.mxu0 %vm427_vm1, %v817_v16 }
 0x16a   : > { %v478_v0 = vpop.f32.mrf.mxu0 }
 0x16b   : > { %vm546_vm11 = vcmp.ne.f32.partialorder %v478_v0, %v478_v0 }
 0x16c   : > { %v558_v17 = vsel %vm546_vm11, 0.0, %v478_v0  ;;  %v480_v18 = vpop.f32.mrf.mxu0  ;;  %v773_v19 = vpop.f32.mrf.mxu1 }
 0x16d   : > { %vm570_vm12 = vcmp.eq.f32.partialorder %v558_v17, inf  ;;  %vm547_vm13 = vcmp.ne.f32.partialorder %v480_v18, %v480_v18  ;;  %vm554_vm14 = vcmp.ne.f32.partialorder %v773_v19, %v773_v19 }
 0x16e   : > { %v582_v9 = vsel %vm570_vm12, 3.4028235e+38, %v558_v17  ;;  %v559_v11 = vsel %vm547_vm13, 0.0, %v480_v18  ;;  %v482_v20 = vpop.f32.mrf.mxu0  ;;  %v566_v21 = vsel %vm554_vm14, 0.0, %v773_v19  ;;  %v531_v22 = vpop.f32.mrf.mxu1 }
 0x16f   : > { %vm594_vm0 = vcmp.eq.f32.partialorder %v582_v9, -inf  ;;  %vm571_vm1 = vcmp.eq.f32.partialorder %v559_v11, inf  ;;  %vm549_vm2 = vcmp.ne.f32.partialorder %v482_v20, %v482_v20  ;;  %vm578_vm3 = vcmp.eq.f32.partialorder %v566_v21, inf }
 0x170   : > { %v606_v23 = vsel %vm594_vm0, -3.4028235e+38, %v582_v9  ;;  %vm548_vm4 = vcmp.ne.f32.partialorder %v531_v22, %v531_v22  ;;  %v583_v24 = vsel %vm571_vm1, 3.4028235e+38, %v559_v11  ;;  %v484_v25 = vpop.f32.mrf.mxu0  ;;  %v590_v26 = vsel %vm578_vm3, 3.4028235e+38, %v566_v21  ;;  %v774_v28 = vpop.f32.mrf.mxu1 }
 0x171   : > { %618 = vst [vmem:[%s956_s4] sm:$0xff] %v606_v23  ;;  %v560_v27 = vsel %vm548_vm4, 0.0, %v531_v22  ;;  %vm595_vm5 = vcmp.eq.f32.partialorder %v583_v24, -inf  ;;  %v561_v29 = vsel %vm549_vm2, 0.0, %v482_v20  ;;  %vm602_vm6 = vcmp.eq.f32.partialorder %v590_v26, -inf }
 0x172   : > { %vm572_vm7 = vcmp.eq.f32.partialorder %v560_v27, inf  ;;  %v607_v30 = vsel %vm595_vm5, -3.4028235e+38, %v583_v24  ;;  %vm557_vm8 = vcmp.ne.f32.partialorder %v774_v28, %v774_v28  ;;  %v488_v31 = vpop.f32.mrf.mxu0  ;;  %v614_v32 = vsel %vm602_vm6, -3.4028235e+38, %v590_v26  ;;  %v534_v35 = vpop.f32.mrf.mxu1 }
 0x173   : > { %v584_v33 = vsel %vm572_vm7, 3.4028235e+38, %v560_v27  ;;  %619 = vst [vmem:[%s956_s4 + $0x8] sm:$0xff] %v607_v30  ;;  %v569_v34 = vsel %vm557_vm8, 0.0, %v774_v28  ;;  %vm573_vm9 = vcmp.eq.f32.partialorder %v561_v29, inf  ;;  %627 = vst.msk [vmem:[%s956_s4 + $0x40] sm:$0xff] %vm620_vm15, %v614_v32  ;;  %vm551_vm12 = vcmp.ne.f32.partialorder %v534_v35, %v534_v35 }
 0x174   : > { %vm596_vm10 = vcmp.eq.f32.partialorder %v584_v33, -inf  ;;  %vm581_vm11 = vcmp.eq.f32.partialorder %v569_v34, inf  ;;  %v585_v36 = vsel %vm573_vm9, 3.4028235e+38, %v561_v29  ;;  %v490_v37 = vpop.f32.mrf.mxu0  ;;  %v563_v40 = vsel %vm551_vm12, 0.0, %v534_v35 }
 0x175   : > { %v608_v38 = vsel %vm596_vm10, -3.4028235e+38, %v584_v33  ;;  %v593_v39 = vsel %vm581_vm11, 3.4028235e+38, %v569_v34  ;;  %vm597_vm13 = vcmp.eq.f32.partialorder %v585_v36, -inf  ;;  %vm575_vm0 = vcmp.eq.f32.partialorder %v563_v40, inf }
 0x176   : > { %621 = vst.msk [vmem:[%s956_s4 + $0x10] sm:$0xff] %vm620_vm15, %v608_v38  ;;  %vm605_vm14 = vcmp.eq.f32.partialorder %v593_v39, -inf  ;;  %v609_v41 = vsel %vm597_vm13, -3.4028235e+38, %v585_v36  ;;  %vm550_vm1 = vcmp.ne.f32.partialorder %v484_v25, %v484_v25  ;;  %v492_v42 = vpop.f32.mrf.mxu0  ;;  %v587_v44 = vsel %vm575_vm0, 3.4028235e+38, %v563_v40 }
 0x177   : > { %v617_v43 = vsel %vm605_vm14, -3.4028235e+38, %v593_v39  ;;  %622 = vst [vmem:[%s956_s4 + $0x18] sm:$0xff] %v609_v41  ;;  %v562_v45 = vsel %vm550_vm1, 0.0, %v484_v25  ;;  %vm552_vm2 = vcmp.ne.f32.partialorder %v488_v31, %v488_v31  ;;  %vm599_vm3 = vcmp.eq.f32.partialorder %v587_v44, -inf }
 0x178   : > { %630 = vst.msk [vmem:[%s956_s4 + $0x58] sm:$0xff] %vm620_vm15, %v617_v43  ;;  %vm574_vm4 = vcmp.eq.f32.partialorder %v562_v45, inf  ;;  %v564_v46 = vsel %vm552_vm2, 0.0, %v488_v31  ;;  %vm553_vm5 = vcmp.ne.f32.partialorder %v490_v37, %v490_v37  ;;  %v611_v47 = vsel %vm599_vm3, -3.4028235e+38, %v587_v44  ;;  %v494_v50 = vpop.f32.mrf.mxu0 }
 0x179   : > { %v586_v48 = vsel %vm574_vm4, 3.4028235e+38, %v562_v45  ;;  %vm576_vm6 = vcmp.eq.f32.partialorder %v564_v46, inf  ;;  %v565_v49 = vsel %vm553_vm5, 0.0, %v490_v37  ;;  %624 = vst.msk [vmem:[%s956_s4 + $0x28] sm:$0xff] %vm620_vm15, %v611_v47  ;;  %vm555_vm9 = vcmp.ne.f32.partialorder %v492_v42, %v492_v42 }
 0x17a   : > { %vm598_vm7 = vcmp.eq.f32.partialorder %v586_v48, -inf  ;;  %v588_v51 = vsel %vm576_vm6, 3.4028235e+38, %v564_v46  ;;  %vm577_vm8 = vcmp.eq.f32.partialorder %v565_v49, inf  ;;  %v567_v54 = vsel %vm555_vm9, 0.0, %v492_v42 }
 0x17b   : > { %v610_v52 = vsel %vm598_vm7, -3.4028235e+38, %v586_v48  ;;  %vm600_vm10 = vcmp.eq.f32.partialorder %v588_v51, -inf  ;;  %v589_v53 = vsel %vm577_vm8, 3.4028235e+38, %v565_v49  ;;  %vm579_vm12 = vcmp.eq.f32.partialorder %v567_v54, inf }
 0x17c   : > { %623 = vst [vmem:[%s956_s4 + $0x20] sm:$0xff] %v610_v52  ;;  %v612_v55 = vsel %vm600_vm10, -3.4028235e+38, %v588_v51  ;;  %vm601_vm11 = vcmp.eq.f32.partialorder %v589_v53, -inf  ;;  %vm556_vm13 = vcmp.ne.f32.partialorder %v494_v50, %v494_v50  ;;  %v591_v57 = vsel %vm579_vm12, 3.4028235e+38, %v567_v54 }
 0x17d   : > { %625 = vst [vmem:[%s956_s4 + $0x30] sm:$0xff] %v612_v55  ;;  %v613_v56 = vsel %vm601_vm11, -3.4028235e+38, %v589_v53  ;;  %v568_v58 = vsel %vm556_vm13, 0.0, %v494_v50  ;;  %vm603_vm15 = vcmp.eq.f32.partialorder %v591_v57, -inf }
 0x17e   : > { %626 = vst [vmem:[%s956_s4 + $0x38] sm:$0xff] %v613_v56  ;;  %vm580_vm14 = vcmp.eq.f32.partialorder %v568_v58, inf  ;;  %v615_v59 = vsel %vm603_vm15, -3.4028235e+38, %v591_v57 }
 0x17f   : > { %v592_v60 = vsel %vm580_vm14, 3.4028235e+38, %v568_v58  ;;  %628 = vst [vmem:[%s956_s4 + $0x48] sm:$0xff] %v615_v59 }
 0x180   : > { %vm604_vm0 = vcmp.eq.f32.partialorder %v592_v60, -inf }
 0x181   : > { %v616_v61 = vsel %vm604_vm0, -3.4028235e+38, %v592_v60 }
 0x182   : > { %629 = vst [vmem:[%s956_s4 + $0x50] sm:$0xff] %v616_v61 }
 0x183 PF: > { %s12_s11 = sadd.s32 1, %s840_s11   ;;  %s986_s9 = smov %s836_s10 }
 0x184   : > { %p9_p5 = scmp.ge.s32.totalorder %s12_s11, 4   ;;  %s987_s10 = smov %s989_s12 }
 0x186   :  { %11 = sbr.rel (!%p9_p5) target bundleno = 2 (0x2), region = 58 }

</bundles_post_ra>
